<compile_context>
chip_gen: v5e
topology: v5e:2x2
jax: 0.10.0
libtpu: 0.0.40
codegen_flags: <defaults>
</compile_context>

<pallas_src>
import functools
import math

import jax
import jax.numpy as jnp
from jax.experimental import pallas as pl
from jax.experimental.pallas import tpu as pltpu


# ------------------------------ in-kernel helpers ------------------------------

def _layernorm(x, g, b, eps):
    mu = jnp.mean(x, axis=-1, keepdims=True)
    var = jnp.mean(jnp.square(x - mu), axis=-1, keepdims=True)
    return (x - mu) * jax.lax.rsqrt(var + eps) * g + b


def _erf(x):
    # Abramowitz & Stegun 7.1.26 (max abs err ~1.5e-7): avoids relying on a native erf
    # lowering inside Mosaic; the exp goes to the EUP slot (free under MXU work).
    p = 0.3275911
    a1, a2, a3, a4, a5 = (0.254829592, -0.284496736, 1.421413741,
                          -1.453152027, 1.061405429)
    ax = jnp.abs(x)
    t = 1.0 / (1.0 + p * ax)
    poly = ((((a5 * t + a4) * t + a3) * t + a2) * t + a1) * t
    y = 1.0 - poly * jnp.exp(-ax * ax)
    return jnp.where(x < 0.0, -y, y)


def _gelu_erf(x):
    return 0.5 * x * (1.0 + _erf(x * (1.0 / math.sqrt(2.0))))


# ------------------------------ fused whole-model kernel ------------------------------

def _encoder_stack_kernel(x_ref, kbias_ref, ing_ref, inb_ref,
                          wqkv_ref, bqkv_ref, wo_ref, bo_ref,
                          ln1g_ref, ln1b_ref, w1_ref, b1_ref,
                          w2_ref, b2_ref, ln2g_ref, ln2b_ref,
                          o_ref, *, batch, seq, n_heads, head_dim, n_bert):
    d_model = n_heads * head_dim
    scale = 1.0 / math.sqrt(head_dim)

    layer = pl.program_id(0)
    is_bert = layer < n_bert                      # BERT layers first, then nn.Transformer
    eps = jnp.where(is_bert, jnp.float32(1e-12), jnp.float32(1e-5))

    # Grid step 0: seed the VMEM-resident activation (o_ref is the carry) from the
    # embedding slab, applying the BERT embedding LayerNorm (folded in, no extra call).
    @pl.when(layer == 0)
    def _():
        o_ref[...] = _layernorm(x_ref[...], ing_ref[...], inb_ref[...],
                                1e-12).astype(o_ref.dtype)

    x = o_ref[...]                                # (B*S, D) f32, resident across layers
    kbias = kbias_ref[...]                        # (B, S) additive key-padding bias (f32)

    # Fused QKV projection: one MXU pass over the [D, 3D] bf16 weight block.
    qkv = jnp.dot(x.astype(jnp.bfloat16), wqkv_ref[...],
                  preferred_element_type=jnp.float32) + bqkv_ref[...]
    q = qkv[:, :d_model] * scale                  # fold 1/sqrt(dh) into Q once
    k = qkv[:, d_model:2 * d_model].astype(jnp.bfloat16)
    v = qkv[:, 2 * d_model:].astype(jnp.bfloat16)

    # Per-batch S x S attention tiles with per-head static lane slices: no (B*S)^2
    # scores, no block-diagonal redundancy, no n_heads-x extra contraction work.
    # Softmax statistics and the mask add stay in f32.
    ctx_rows = []
    for b in range(batch):
        r0 = b * seq
        qb = q[r0:r0 + seq]                       # (S, D) f32
        kb = k[r0:r0 + seq]                       # (S, D) bf16
        vb = v[r0:r0 + seq]                       # (S, D) bf16
        bias_b = kbias[b:b + 1, :]                # (1, S) broadcast over query rows
        heads = []
        for h in range(n_heads):
            c0 = h * head_dim
            s = jax.lax.dot_general(
                qb[:, c0:c0 + head_dim].astype(jnp.bfloat16),
                kb[:, c0:c0 + head_dim],
                (((1,), (1,)), ((), ())),
                preferred_element_type=jnp.float32) + bias_b
            s = s - jnp.max(s, axis=-1, keepdims=True)
            p = jnp.exp(s)
            p = p * pl.reciprocal(jnp.sum(p, axis=-1, keepdims=True), approx=True)
            heads.append(jnp.dot(p.astype(jnp.bfloat16), vb[:, c0:c0 + head_dim],
                                 preferred_element_type=jnp.float32))
        ctx_rows.append(jnp.concatenate(heads, axis=-1))
    ctx = jnp.concatenate(ctx_rows, axis=0)       # (B*S, D) f32

    attn = jnp.dot(ctx.astype(jnp.bfloat16), wo_ref[...],
                   preferred_element_type=jnp.float32) + bo_ref[...]
    x = _layernorm(x + attn, ln1g_ref[...], ln1b_ref[...], eps)

    hid = jnp.dot(x.astype(jnp.bfloat16), w1_ref[...],
                  preferred_element_type=jnp.float32) + b1_ref[...]
    # BERT layers: exact (erf) GELU; nn.TransformerEncoderLayer: ReLU.
    hid = jnp.where(is_bert, _gelu_erf(hid), jnp.maximum(hid, 0.0))
    ffn = jnp.dot(hid.astype(jnp.bfloat16), w2_ref[...],
                  preferred_element_type=jnp.float32) + b2_ref[...]
    x = _layernorm(x + ffn, ln2g_ref[...], ln2b_ref[...], eps)

    o_ref[...] = x.astype(o_ref.dtype)


_WEIGHT_ORDER = ("wqkv", "bqkv", "wo", "bo", "ln1_g", "ln1_b",
                 "w1", "b1", "w2", "b2", "ln2_g", "ln2_b")
_MATMUL_WEIGHTS = ("wqkv", "wo", "w1", "w2")


def merge_stacks(bert_stack, tx_stack):
    """Concatenate BERT + nn.TransformerEncoder layer stacks into one [L,...] stack
    (done once, outside the forward); big matmul weights are stored in bf16."""
    merged = {}
    for name in _WEIGHT_ORDER:
        w = jnp.concatenate([bert_stack[name], tx_stack[name]], axis=0)
        if name in _MATMUL_WEIGHTS:
            w = w.astype(jnp.bfloat16)            # MXU operands bf16; accumulation f32
        merged[name] = w
    return merged


def run_encoder_stack(x, key_bias, in_g, in_b, stack, *, n_heads, n_bert, batch, seq):
    """One pallas_call for the whole encoder (BERT layers followed by tx layers)."""
    n, d = x.shape
    num_layers = stack["wqkv"].shape[0]

    def full_spec(a):
        nd = a.ndim
        return pl.BlockSpec(a.shape, lambda l, nd=nd: (0,) * nd)

    def layer_spec(a):
        tail = a.shape[1:]
        return pl.BlockSpec((pl.Squeezed(),) + tail,
                            lambda l, nt=len(tail): (l,) + (0,) * nt)

    in_specs = ([full_spec(x), full_spec(key_bias), full_spec(in_g), full_spec(in_b)]
                + [layer_spec(stack[k]) for k in _WEIGHT_ORDER])

    kernel = functools.partial(
        _encoder_stack_kernel,
        batch=batch, seq=seq, n_heads=n_heads, head_dim=d // n_heads, n_bert=n_bert)

    return pl.pallas_call(
        kernel,
        grid=(num_layers,),
        in_specs=in_specs,
        out_specs=pl.BlockSpec((n, d), lambda l: (0, 0)),   # VMEM-resident carry
        out_shape=jax.ShapeDtypeStruct((n, d), jnp.float32),
        compiler_params=pltpu.CompilerParams(
            dimension_semantics=("arbitrary",),
            vmem_limit_bytes=64 * 1024 * 1024),
    )(x, key_bias, in_g, in_b, *[stack[k] for k in _WEIGHT_ORDER])


# ------------------------------ model forward ------------------------------

def text_encoder_forward(params, stack, input_ids, attention_mask, *, n_heads, n_bert):
    B, S = input_ids.shape
    D = params["word_emb"].shape[1]

    # BERT embeddings (gathers/adds are plain-JAX glue; the embedding LayerNorm is
    # folded into grid step 0 of the fused stack kernel).
    emb = (params["word_emb"][input_ids]
           + params["pos_emb"][:S][None, :, :]
           + params["type_emb"][0][None, None, :])
    x = emb.reshape(B * S, D)

    # Tiny (B, S) additive key-padding bias; the per-batch score tiles are built
    # in-kernel, so no (B*S)^2 mask is ever materialized.
    key_bias = jnp.where(attention_mask != 0, 0.0, -1e9).astype(jnp.float32)

    in_g = params["emb_ln_g"].reshape(1, D)
    in_b = params["emb_ln_b"].reshape(1, D)

    out = run_encoder_stack(x, key_bias, in_g, in_b, stack,
                            n_heads=n_heads, n_bert=n_bert, batch=B, seq=S)
    # add_noise=False / eval mode -> dropout & Gaussian noise are identities.
    return out.reshape(B, S, D)


# ------------------------------ parameter init ------------------------------

def init_layer_stack(key, num_layers, d, dff):
    ks = jax.random.split(key, 4)
    s = 0.02
    nrm = lambda k, shape: jax.random.normal(k, shape, jnp.float32) * s
    return dict(
        wqkv=nrm(ks[0], (num_layers, d, 3 * d)),      # [Wq | Wk | Wv] fused
        bqkv=jnp.zeros((num_layers, 1, 3 * d), jnp.float32),
        wo=nrm(ks[1], (num_layers, d, d)),
        bo=jnp.zeros((num_layers, 1, d), jnp.float32),
        ln1_g=jnp.ones((num_layers, 1, d), jnp.float32),
        ln1_b=jnp.zeros((num_layers, 1, d), jnp.float32),
        w1=nrm(ks[2], (num_layers, d, dff)),
        b1=jnp.zeros((num_layers, 1, dff), jnp.float32),
        w2=nrm(ks[3], (num_layers, dff, d)),
        b2=jnp.zeros((num_layers, 1, d), jnp.float32),
        ln2_g=jnp.ones((num_layers, 1, d), jnp.float32),
        ln2_b=jnp.zeros((num_layers, 1, d), jnp.float32),
    )


def init_params(key, vocab, maxpos, d, dff, n_bert_layers, n_tx_layers):
    ks = jax.random.split(key, 5)
    s = 0.02
    return dict(
        word_emb=jax.random.normal(ks[0], (vocab, d), jnp.float32) * s,
        pos_emb=jax.random.normal(ks[1], (maxpos, d), jnp.float32) * s,
        type_emb=jax.random.normal(ks[2], (2, d), jnp.float32) * s,
        emb_ln_g=jnp.ones((d,), jnp.float32),
        emb_ln_b=jnp.zeros((d,), jnp.float32),
        bert=init_layer_stack(ks[3], n_bert_layers, d, dff),
        tx=init_layer_stack(ks[4], n_tx_layers, d, dff),
    )


# ------------------------------ pure-JAX reference (f32) ------------------------------

def reference_forward(params, input_ids, attention_mask, n_heads):
    B, S = input_ids.shape
    D = params["word_emb"].shape[1]
    H, dh = n_heads, D // n_heads

    def ln(x, g, b, eps):
        mu = x.mean(-1, keepdims=True)
        var = ((x - mu) ** 2).mean(-1, keepdims=True)
        return (x - mu) / jnp.sqrt(var + eps) * g + b

    x = (params["word_emb"][input_ids] + params["pos_emb"][:S][None]
         + params["type_emb"][0][None, None])
    x = ln(x, params["emb_ln_g"], params["emb_ln_b"], 1e-12)
    kbias = jnp.where(attention_mask != 0, 0.0, -1e9)[:, None, None, :]

    def layer(x, p, i, act, eps):
        qkv = x @ p["wqkv"][i] + p["bqkv"][i]
        q, k, v = jnp.split(qkv, 3, axis=-1)
        q = q.reshape(B, S, H, dh).transpose(0, 2, 1, 3) / math.sqrt(dh)
        k = k.reshape(B, S, H, dh).transpose(0, 2, 1, 3)
        v = v.reshape(B, S, H, dh).transpose(0, 2, 1, 3)
        a = jax.nn.softmax(q @ k.transpose(0, 1, 3, 2) + kbias, axis=-1)
        ctx = (a @ v).transpose(0, 2, 1, 3).reshape(B, S, D)
        x = ln(x + ctx @ p["wo"][i] + p["bo"][i], p["ln1_g"][i], p["ln1_b"][i], eps)
        h = act(x @ p["w1"][i] + p["b1"][i])
        return ln(x + h @ p["w2"][i] + p["b2"][i], p["ln2_g"][i], p["ln2_b"][i], eps)

    for i in range(params["bert"]["wqkv"].shape[0]):
        x = layer(x, params["bert"], i, lambda t: jax.nn.gelu(t, approximate=False), 1e-12)
    for i in range(params["tx"]["wqkv"].shape[0]):
        x = layer(x, params["tx"], i, lambda t: jnp.maximum(t, 0.0), 1e-5)
    return x


# ----------------------------------- main -----------------------------------

if __name__ == "__main__":
    EMBED_DIM = 128      # lane-dense hidden size (multiple of 128)
    N_HEADS = 4          # head_dim = 32
    BERT_LAYERS = 2      # synthetic "bert-mini" layers
    NUM_LAYERS = 2       # custom nn.TransformerEncoder layers
    DIM_FF = 256         # feedforward dim (multiple of 128)
    VOCAB = 64
    MAX_POS = 16
    B, S = 2, 8

    key = jax.random.PRNGKey(0)
    k_params, k_ids = jax.random.split(key)

    params = init_params(k_params, VOCAB, MAX_POS, EMBED_DIM, DIM_FF,
                         BERT_LAYERS, NUM_LAYERS)
    stack = merge_stacks(params["bert"], params["tx"])   # one fused [L,...] layer stack

    input_ids = jax.random.randint(k_ids, (B, S), 0, VOCAB, dtype=jnp.int32)
    attention_mask = jnp.array(
        [[1, 1, 1, 1, 1, 1, 1, 1],
         [1, 1, 1, 1, 1, 0, 0, 0]], dtype=jnp.int32)

    fwd = jax.jit(lambda ids, mask: text_encoder_forward(
        params, stack, ids, mask, n_heads=N_HEADS, n_bert=BERT_LAYERS))
    out = jax.block_until_ready(fwd(input_ids, attention_mask))

    assert out.shape == (B, S, EMBED_DIM), out.shape
    assert out.dtype == jnp.float32
    assert bool(jnp.all(jnp.isfinite(out)))

    # Loose sanity check vs pure-JAX f32 reference (kernel matmuls run in bf16).
    ref = reference_forward(params, input_ids, attention_mask, N_HEADS)
    max_err = float(jnp.max(jnp.abs(out - ref)))
    assert max_err < 0.5, f"max |kernel - reference| = {max_err}"

    print("KERNEL_OK")
</pallas_src>

<mosaic_0001>
module attributes {stable_mosaic.version = 11 : i64} {
  func.func @_encoder_stack_kernel(%arg0: i32, %arg1: memref<16x128xf32, #tpu.memory_space<vmem>>, %arg2: memref<2x8xf32, #tpu.memory_space<vmem>>, %arg3: memref<1x128xf32, #tpu.memory_space<vmem>>, %arg4: memref<1x128xf32, #tpu.memory_space<vmem>>, %arg5: memref<1x128x384xbf16, #tpu.memory_space<vmem>>, %arg6: memref<1x1x384xf32, #tpu.memory_space<vmem>>, %arg7: memref<1x128x128xbf16, #tpu.memory_space<vmem>>, %arg8: memref<1x1x128xf32, #tpu.memory_space<vmem>>, %arg9: memref<1x1x128xf32, #tpu.memory_space<vmem>>, %arg10: memref<1x1x128xf32, #tpu.memory_space<vmem>>, %arg11: memref<1x128x256xbf16, #tpu.memory_space<vmem>>, %arg12: memref<1x1x256xf32, #tpu.memory_space<vmem>>, %arg13: memref<1x256x128xbf16, #tpu.memory_space<vmem>>, %arg14: memref<1x1x128xf32, #tpu.memory_space<vmem>>, %arg15: memref<1x1x128xf32, #tpu.memory_space<vmem>>, %arg16: memref<1x1x128xf32, #tpu.memory_space<vmem>>, %arg17: memref<16x128xf32, #tpu.memory_space<vmem>>) attributes {dimension_semantics = [#tpu.dimension_semantics<arbitrary>], iteration_bounds = array<i64: 4>, scalar_prefetch = 0 : i64, scratch_operands = 0 : i64, tpu.core_type = #tpu.core_type<tc>, window_params = [{pipeline_mode = #tpu.pipeline_mode<synchronous>, transform_indices = @transform_0, window_bounds = array<i64: 16, 128>}, {pipeline_mode = #tpu.pipeline_mode<synchronous>, transform_indices = @transform_1, window_bounds = array<i64: 2, 8>}, {pipeline_mode = #tpu.pipeline_mode<synchronous>, transform_indices = @transform_2, window_bounds = array<i64: 1, 128>}, {pipeline_mode = #tpu.pipeline_mode<synchronous>, transform_indices = @transform_3, window_bounds = array<i64: 1, 128>}, {transform_indices = @transform_4, window_bounds = array<i64: 1, 128, 384>}, {transform_indices = @transform_5, window_bounds = array<i64: 1, 1, 384>}, {transform_indices = @transform_6, window_bounds = array<i64: 1, 128, 128>}, {transform_indices = @transform_7, window_bounds = array<i64: 1, 1, 128>}, {transform_indices = @transform_8, window_bounds = array<i64: 1, 1, 128>}, {transform_indices = @transform_9, window_bounds = array<i64: 1, 1, 128>}, {transform_indices = @transform_10, window_bounds = array<i64: 1, 128, 256>}, {transform_indices = @transform_11, window_bounds = array<i64: 1, 1, 256>}, {transform_indices = @transform_12, window_bounds = array<i64: 1, 256, 128>}, {transform_indices = @transform_13, window_bounds = array<i64: 1, 1, 128>}, {transform_indices = @transform_14, window_bounds = array<i64: 1, 1, 128>}, {transform_indices = @transform_15, window_bounds = array<i64: 1, 1, 128>}, {pipeline_mode = #tpu.pipeline_mode<synchronous>, transform_indices = @transform_16, window_bounds = array<i64: 16, 128>}]} {
    %c2_i32 = arith.constant 2 : i32
    %0 = arith.cmpi slt, %arg0, %c2_i32 : i32
    %cst = arith.constant 9.99999996E-13 : f32
    %cst_0 = arith.constant 9.99999974E-6 : f32
    %1 = arith.select %0, %cst, %cst_0 : f32
    %c0_i32 = arith.constant 0 : i32
    %2 = arith.cmpi eq, %arg0, %c0_i32 : i32
    %3 = arith.extui %2 : i1 to i32
    %c0_i32_1 = arith.constant 0 : i32
    %4 = arith.cmpi ne, %3, %c0_i32_1 : i32
    scf.if %4 {
      %c0_104 = arith.constant 0 : index
      %c0_105 = arith.constant 0 : index
      %307 = vector.load %arg1[%c0_104, %c0_105] : memref<16x128xf32, #tpu.memory_space<vmem>>, vector<16x128xf32>
      %c0_106 = arith.constant 0 : index
      %c0_107 = arith.constant 0 : index
      %308 = vector.load %arg3[%c0_106, %c0_107] : memref<1x128xf32, #tpu.memory_space<vmem>>, vector<1x128xf32>
      %c0_108 = arith.constant 0 : index
      %c0_109 = arith.constant 0 : index
      %309 = vector.load %arg4[%c0_108, %c0_109] : memref<1x128xf32, #tpu.memory_space<vmem>>, vector<1x128xf32>
      %cst_110 = arith.constant dense<0.000000e+00> : vector<16xf32>
      %310 = vector.multi_reduction <add>, %307, %cst_110 [1] : vector<16x128xf32> to vector<16xf32>
      %311 = vector.shape_cast %310 : vector<16xf32> to vector<16x1xf32>
      %cst_111 = arith.constant 1.280000e+02 : f32
      %312 = vector.broadcast %cst_111 : f32 to vector<16x1xf32>
      %313 = arith.divf %311, %312 : vector<16x1xf32>
      %314 = vector.broadcast %313 : vector<16x1xf32> to vector<16x128xf32>
      %315 = arith.subf %307, %314 : vector<16x128xf32>
      %316 = arith.mulf %315, %315 : vector<16x128xf32>
      %cst_112 = arith.constant dense<0.000000e+00> : vector<16xf32>
      %317 = vector.multi_reduction <add>, %316, %cst_112 [1] : vector<16x128xf32> to vector<16xf32>
      %318 = vector.shape_cast %317 : vector<16xf32> to vector<16x1xf32>
      %cst_113 = arith.constant 1.280000e+02 : f32
      %319 = vector.broadcast %cst_113 : f32 to vector<16x1xf32>
      %320 = arith.divf %318, %319 : vector<16x1xf32>
      %321 = vector.broadcast %313 : vector<16x1xf32> to vector<16x128xf32>
      %322 = arith.subf %307, %321 : vector<16x128xf32>
      %cst_114 = arith.constant 9.99999996E-13 : f32
      %323 = vector.broadcast %cst_114 : f32 to vector<16x1xf32>
      %324 = arith.addf %320, %323 : vector<16x1xf32>
      %325 = math.rsqrt %324 : vector<16x1xf32>
      %326 = vector.broadcast %325 : vector<16x1xf32> to vector<16x128xf32>
      %327 = arith.mulf %322, %326 : vector<16x128xf32>
      %328 = vector.broadcast %308 : vector<1x128xf32> to vector<16x128xf32>
      %329 = arith.mulf %327, %328 : vector<16x128xf32>
      %330 = vector.broadcast %309 : vector<1x128xf32> to vector<16x128xf32>
      %331 = arith.addf %329, %330 : vector<16x128xf32>
      %c0_115 = arith.constant 0 : index
      %c0_116 = arith.constant 0 : index
      %332 = vector.load %arg17[%c0_115, %c0_116] : memref<16x128xf32, #tpu.memory_space<vmem>>, vector<16x128xf32>
      tpu.vector_store %arg17[%c0_115, %c0_116], %331 {strides = array<i32>} : memref<16x128xf32, #tpu.memory_space<vmem>>, vector<16x128xf32>,
    } else {
    }
    %c0 = arith.constant 0 : index
    %c0_2 = arith.constant 0 : index
    %5 = vector.load %arg17[%c0, %c0_2] : memref<16x128xf32, #tpu.memory_space<vmem>>, vector<16x128xf32>
    %c0_3 = arith.constant 0 : index
    %c0_4 = arith.constant 0 : index
    %6 = vector.load %arg2[%c0_3, %c0_4] : memref<2x8xf32, #tpu.memory_space<vmem>>, vector<2x8xf32>
    %7 = arith.truncf %5 : vector<16x128xf32> to vector<16x128xbf16>
    %c0_5 = arith.constant 0 : index
    %c0_6 = arith.constant 0 : index
    %c0_7 = arith.constant 0 : index
    %8 = vector.load %arg5[%c0_5, %c0_6, %c0_7] : memref<1x128x384xbf16, #tpu.memory_space<vmem>>, vector<1x128x384xbf16>
    %9 = vector.shape_cast %8 : vector<1x128x384xbf16> to vector<128x384xbf16>
    %cst_8 = arith.constant dense<0.000000e+00> : vector<16x384xf32>
    %10 = tpu.matmul %7, %9, %cst_8 {dimension_numbers = #tpu.dot_dimension_numbers<[1], [0], [0], [1], [0, 0, 1, 1], [], []>} : vector<16x128xbf16>, vector<128x384xbf16>, vector<16x384xf32> -> vector<16x384xf32>
    %c0_9 = arith.constant 0 : index
    %c0_10 = arith.constant 0 : index
    %c0_11 = arith.constant 0 : index
    %11 = vector.load %arg6[%c0_9, %c0_10, %c0_11] : memref<1x1x384xf32, #tpu.memory_space<vmem>>, vector<1x1x384xf32>
    %12 = vector.shape_cast %11 : vector<1x1x384xf32> to vector<1x384xf32>
    %13 = vector.broadcast %12 : vector<1x384xf32> to vector<16x384xf32>
    %14 = arith.addf %10, %13 : vector<16x384xf32>
    %15 = vector.extract_strided_slice %14 {offsets = [0, 0], sizes = [16, 128], strides = [1, 1]} : vector<16x384xf32> to vector<16x128xf32>
    %cst_12 = arith.constant 0.176776692 : f32
    %16 = vector.broadcast %cst_12 : f32 to vector<16x128xf32>
    %17 = arith.mulf %15, %16 : vector<16x128xf32>
    %18 = vector.extract_strided_slice %14 {offsets = [0, 128], sizes = [16, 128], strides = [1, 1]} : vector<16x384xf32> to vector<16x128xf32>
    %19 = arith.truncf %18 : vector<16x128xf32> to vector<16x128xbf16>
    %20 = vector.extract_strided_slice %14 {offsets = [0, 256], sizes = [16, 128], strides = [1, 1]} : vector<16x384xf32> to vector<16x128xf32>
    %21 = arith.truncf %20 : vector<16x128xf32> to vector<16x128xbf16>
    %22 = vector.extract_strided_slice %17 {offsets = [0, 0], sizes = [8, 128], strides = [1, 1]} : vector<16x128xf32> to vector<8x128xf32>
    %23 = vector.extract_strided_slice %19 {offsets = [0, 0], sizes = [8, 128], strides = [1, 1]} : vector<16x128xbf16> to vector<8x128xbf16>
    %24 = vector.extract_strided_slice %21 {offsets = [0, 0], sizes = [8, 128], strides = [1, 1]} : vector<16x128xbf16> to vector<8x128xbf16>
    %25 = vector.extract_strided_slice %6 {offsets = [0, 0], sizes = [1, 8], strides = [1, 1]} : vector<2x8xf32> to vector<1x8xf32>
    %26 = vector.extract_strided_slice %22 {offsets = [0, 0], sizes = [8, 32], strides = [1, 1]} : vector<8x128xf32> to vector<8x32xf32>
    %27 = arith.truncf %26 : vector<8x32xf32> to vector<8x32xbf16>
    %28 = vector.extract_strided_slice %23 {offsets = [0, 0], sizes = [8, 32], strides = [1, 1]} : vector<8x128xbf16> to vector<8x32xbf16>
    %cst_13 = arith.constant dense<0.000000e+00> : vector<8x8xf32>
    %29 = tpu.matmul %27, %28, %cst_13 {dimension_numbers = #tpu.dot_dimension_numbers<[1], [1], [0], [0], [0, 0, 1, 0], [], []>} : vector<8x32xbf16>, vector<8x32xbf16>, vector<8x8xf32> -> vector<8x8xf32>
    %30 = vector.broadcast %25 : vector<1x8xf32> to vector<8x8xf32>
    %31 = arith.addf %29, %30 : vector<8x8xf32>
    %cst_14 = arith.constant dense<0xFF800000> : vector<8xf32>
    %32 = vector.multi_reduction <maximumf>, %31, %cst_14 [1] : vector<8x8xf32> to vector<8xf32>
    %33 = vector.shape_cast %32 : vector<8xf32> to vector<8x1xf32>
    %34 = vector.broadcast %33 : vector<8x1xf32> to vector<8x8xf32>
    %35 = arith.subf %31, %34 : vector<8x8xf32>
    %36 = math.exp %35 : vector<8x8xf32>
    %cst_15 = arith.constant dense<0.000000e+00> : vector<8xf32>
    %37 = vector.multi_reduction <add>, %36, %cst_15 [1] : vector<8x8xf32> to vector<8xf32>
    %38 = vector.shape_cast %37 : vector<8xf32> to vector<8x1xf32>
    %39 = tpu.reciprocal %38 {approx = true} : vector<8x1xf32> -> vector<8x1xf32>
    %40 = vector.broadcast %39 : vector<8x1xf32> to vector<8x8xf32>
    %41 = arith.mulf %36, %40 : vector<8x8xf32>
    %42 = arith.truncf %41 : vector<8x8xf32> to vector<8x8xbf16>
    %43 = vector.extract_strided_slice %24 {offsets = [0, 0], sizes = [8, 32], strides = [1, 1]} : vector<8x128xbf16> to vector<8x32xbf16>
    %cst_16 = arith.constant dense<0.000000e+00> : vector<8x32xf32>
    %44 = tpu.matmul %42, %43, %cst_16 {dimension_numbers = #tpu.dot_dimension_numbers<[1], [0], [0], [1], [0, 0, 1, 1], [], []>} : vector<8x8xbf16>, vector<8x32xbf16>, vector<8x32xf32> -> vector<8x32xf32>
    %45 = vector.extract_strided_slice %22 {offsets = [0, 32], sizes = [8, 32], strides = [1, 1]} : vector<8x128xf32> to vector<8x32xf32>
    %46 = arith.truncf %45 : vector<8x32xf32> to vector<8x32xbf16>
    %47 = vector.extract_strided_slice %23 {offsets = [0, 32], sizes = [8, 32], strides = [1, 1]} : vector<8x128xbf16> to vector<8x32xbf16>
    %cst_17 = arith.constant dense<0.000000e+00> : vector<8x8xf32>
    %48 = tpu.matmul %46, %47, %cst_17 {dimension_numbers = #tpu.dot_dimension_numbers<[1], [1], [0], [0], [0, 0, 1, 0], [], []>} : vector<8x32xbf16>, vector<8x32xbf16>, vector<8x8xf32> -> vector<8x8xf32>
    %49 = vector.broadcast %25 : vector<1x8xf32> to vector<8x8xf32>
    %50 = arith.addf %48, %49 : vector<8x8xf32>
    %cst_18 = arith.constant dense<0xFF800000> : vector<8xf32>
    %51 = vector.multi_reduction <maximumf>, %50, %cst_18 [1] : vector<8x8xf32> to vector<8xf32>
    %52 = vector.shape_cast %51 : vector<8xf32> to vector<8x1xf32>
    %53 = vector.broadcast %52 : vector<8x1xf32> to vector<8x8xf32>
    %54 = arith.subf %50, %53 : vector<8x8xf32>
    %55 = math.exp %54 : vector<8x8xf32>
    %cst_19 = arith.constant dense<0.000000e+00> : vector<8xf32>
    %56 = vector.multi_reduction <add>, %55, %cst_19 [1] : vector<8x8xf32> to vector<8xf32>
    %57 = vector.shape_cast %56 : vector<8xf32> to vector<8x1xf32>
    %58 = tpu.reciprocal %57 {approx = true} : vector<8x1xf32> -> vector<8x1xf32>
    %59 = vector.broadcast %58 : vector<8x1xf32> to vector<8x8xf32>
    %60 = arith.mulf %55, %59 : vector<8x8xf32>
    %61 = arith.truncf %60 : vector<8x8xf32> to vector<8x8xbf16>
    %62 = vector.extract_strided_slice %24 {offsets = [0, 32], sizes = [8, 32], strides = [1, 1]} : vector<8x128xbf16> to vector<8x32xbf16>
    %cst_20 = arith.constant dense<0.000000e+00> : vector<8x32xf32>
    %63 = tpu.matmul %61, %62, %cst_20 {dimension_numbers = #tpu.dot_dimension_numbers<[1], [0], [0], [1], [0, 0, 1, 1], [], []>} : vector<8x8xbf16>, vector<8x32xbf16>, vector<8x32xf32> -> vector<8x32xf32>
    %64 = vector.extract_strided_slice %22 {offsets = [0, 64], sizes = [8, 32], strides = [1, 1]} : vector<8x128xf32> to vector<8x32xf32>
    %65 = arith.truncf %64 : vector<8x32xf32> to vector<8x32xbf16>
    %66 = vector.extract_strided_slice %23 {offsets = [0, 64], sizes = [8, 32], strides = [1, 1]} : vector<8x128xbf16> to vector<8x32xbf16>
    %cst_21 = arith.constant dense<0.000000e+00> : vector<8x8xf32>
    %67 = tpu.matmul %65, %66, %cst_21 {dimension_numbers = #tpu.dot_dimension_numbers<[1], [1], [0], [0], [0, 0, 1, 0], [], []>} : vector<8x32xbf16>, vector<8x32xbf16>, vector<8x8xf32> -> vector<8x8xf32>
    %68 = vector.broadcast %25 : vector<1x8xf32> to vector<8x8xf32>
    %69 = arith.addf %67, %68 : vector<8x8xf32>
    %cst_22 = arith.constant dense<0xFF800000> : vector<8xf32>
    %70 = vector.multi_reduction <maximumf>, %69, %cst_22 [1] : vector<8x8xf32> to vector<8xf32>
    %71 = vector.shape_cast %70 : vector<8xf32> to vector<8x1xf32>
    %72 = vector.broadcast %71 : vector<8x1xf32> to vector<8x8xf32>
    %73 = arith.subf %69, %72 : vector<8x8xf32>
    %74 = math.exp %73 : vector<8x8xf32>
    %cst_23 = arith.constant dense<0.000000e+00> : vector<8xf32>
    %75 = vector.multi_reduction <add>, %74, %cst_23 [1] : vector<8x8xf32> to vector<8xf32>
    %76 = vector.shape_cast %75 : vector<8xf32> to vector<8x1xf32>
    %77 = tpu.reciprocal %76 {approx = true} : vector<8x1xf32> -> vector<8x1xf32>
    %78 = vector.broadcast %77 : vector<8x1xf32> to vector<8x8xf32>
    %79 = arith.mulf %74, %78 : vector<8x8xf32>
    %80 = arith.truncf %79 : vector<8x8xf32> to vector<8x8xbf16>
    %81 = vector.extract_strided_slice %24 {offsets = [0, 64], sizes = [8, 32], strides = [1, 1]} : vector<8x128xbf16> to vector<8x32xbf16>
    %cst_24 = arith.constant dense<0.000000e+00> : vector<8x32xf32>
    %82 = tpu.matmul %80, %81, %cst_24 {dimension_numbers = #tpu.dot_dimension_numbers<[1], [0], [0], [1], [0, 0, 1, 1], [], []>} : vector<8x8xbf16>, vector<8x32xbf16>, vector<8x32xf32> -> vector<8x32xf32>
    %83 = vector.extract_strided_slice %22 {offsets = [0, 96], sizes = [8, 32], strides = [1, 1]} : vector<8x128xf32> to vector<8x32xf32>
    %84 = arith.truncf %83 : vector<8x32xf32> to vector<8x32xbf16>
    %85 = vector.extract_strided_slice %23 {offsets = [0, 96], sizes = [8, 32], strides = [1, 1]} : vector<8x128xbf16> to vector<8x32xbf16>
    %cst_25 = arith.constant dense<0.000000e+00> : vector<8x8xf32>
    %86 = tpu.matmul %84, %85, %cst_25 {dimension_numbers = #tpu.dot_dimension_numbers<[1], [1], [0], [0], [0, 0, 1, 0], [], []>} : vector<8x32xbf16>, vector<8x32xbf16>, vector<8x8xf32> -> vector<8x8xf32>
    %87 = vector.broadcast %25 : vector<1x8xf32> to vector<8x8xf32>
    %88 = arith.addf %86, %87 : vector<8x8xf32>
    %cst_26 = arith.constant dense<0xFF800000> : vector<8xf32>
    %89 = vector.multi_reduction <maximumf>, %88, %cst_26 [1] : vector<8x8xf32> to vector<8xf32>
    %90 = vector.shape_cast %89 : vector<8xf32> to vector<8x1xf32>
    %91 = vector.broadcast %90 : vector<8x1xf32> to vector<8x8xf32>
    %92 = arith.subf %88, %91 : vector<8x8xf32>
    %93 = math.exp %92 : vector<8x8xf32>
    %cst_27 = arith.constant dense<0.000000e+00> : vector<8xf32>
    %94 = vector.multi_reduction <add>, %93, %cst_27 [1] : vector<8x8xf32> to vector<8xf32>
    %95 = vector.shape_cast %94 : vector<8xf32> to vector<8x1xf32>
    %96 = tpu.reciprocal %95 {approx = true} : vector<8x1xf32> -> vector<8x1xf32>
    %97 = vector.broadcast %96 : vector<8x1xf32> to vector<8x8xf32>
    %98 = arith.mulf %93, %97 : vector<8x8xf32>
    %99 = arith.truncf %98 : vector<8x8xf32> to vector<8x8xbf16>
    %100 = vector.extract_strided_slice %24 {offsets = [0, 96], sizes = [8, 32], strides = [1, 1]} : vector<8x128xbf16> to vector<8x32xbf16>
    %cst_28 = arith.constant dense<0.000000e+00> : vector<8x32xf32>
    %101 = tpu.matmul %99, %100, %cst_28 {dimension_numbers = #tpu.dot_dimension_numbers<[1], [0], [0], [1], [0, 0, 1, 1], [], []>} : vector<8x8xbf16>, vector<8x32xbf16>, vector<8x32xf32> -> vector<8x32xf32>
    %102 = tpu.concatenate %44, %63, %82, %101 in 1 : vector<8x32xf32>, vector<8x32xf32>, vector<8x32xf32>, vector<8x32xf32> -> vector<8x128xf32>
    %103 = vector.extract_strided_slice %17 {offsets = [8, 0], sizes = [8, 128], strides = [1, 1]} : vector<16x128xf32> to vector<8x128xf32>
    %104 = vector.extract_strided_slice %19 {offsets = [8, 0], sizes = [8, 128], strides = [1, 1]} : vector<16x128xbf16> to vector<8x128xbf16>
    %105 = vector.extract_strided_slice %21 {offsets = [8, 0], sizes = [8, 128], strides = [1, 1]} : vector<16x128xbf16> to vector<8x128xbf16>
    %106 = vector.extract_strided_slice %6 {offsets = [1, 0], sizes = [1, 8], strides = [1, 1]} : vector<2x8xf32> to vector<1x8xf32>
    %107 = vector.extract_strided_slice %103 {offsets = [0, 0], sizes = [8, 32], strides = [1, 1]} : vector<8x128xf32> to vector<8x32xf32>
    %108 = arith.truncf %107 : vector<8x32xf32> to vector<8x32xbf16>
    %109 = vector.extract_strided_slice %104 {offsets = [0, 0], sizes = [8, 32], strides = [1, 1]} : vector<8x128xbf16> to vector<8x32xbf16>
    %cst_29 = arith.constant dense<0.000000e+00> : vector<8x8xf32>
    %110 = tpu.matmul %108, %109, %cst_29 {dimension_numbers = #tpu.dot_dimension_numbers<[1], [1], [0], [0], [0, 0, 1, 0], [], []>} : vector<8x32xbf16>, vector<8x32xbf16>, vector<8x8xf32> -> vector<8x8xf32>
    %111 = vector.broadcast %106 : vector<1x8xf32> to vector<8x8xf32>
    %112 = arith.addf %110, %111 : vector<8x8xf32>
    %cst_30 = arith.constant dense<0xFF800000> : vector<8xf32>
    %113 = vector.multi_reduction <maximumf>, %112, %cst_30 [1] : vector<8x8xf32> to vector<8xf32>
    %114 = vector.shape_cast %113 : vector<8xf32> to vector<8x1xf32>
    %115 = vector.broadcast %114 : vector<8x1xf32> to vector<8x8xf32>
    %116 = arith.subf %112, %115 : vector<8x8xf32>
    %117 = math.exp %116 : vector<8x8xf32>
    %cst_31 = arith.constant dense<0.000000e+00> : vector<8xf32>
    %118 = vector.multi_reduction <add>, %117, %cst_31 [1] : vector<8x8xf32> to vector<8xf32>
    %119 = vector.shape_cast %118 : vector<8xf32> to vector<8x1xf32>
    %120 = tpu.reciprocal %119 {approx = true} : vector<8x1xf32> -> vector<8x1xf32>
    %121 = vector.broadcast %120 : vector<8x1xf32> to vector<8x8xf32>
    %122 = arith.mulf %117, %121 : vector<8x8xf32>
    %123 = arith.truncf %122 : vector<8x8xf32> to vector<8x8xbf16>
    %124 = vector.extract_strided_slice %105 {offsets = [0, 0], sizes = [8, 32], strides = [1, 1]} : vector<8x128xbf16> to vector<8x32xbf16>
    %cst_32 = arith.constant dense<0.000000e+00> : vector<8x32xf32>
    %125 = tpu.matmul %123, %124, %cst_32 {dimension_numbers = #tpu.dot_dimension_numbers<[1], [0], [0], [1], [0, 0, 1, 1], [], []>} : vector<8x8xbf16>, vector<8x32xbf16>, vector<8x32xf32> -> vector<8x32xf32>
    %126 = vector.extract_strided_slice %103 {offsets = [0, 32], sizes = [8, 32], strides = [1, 1]} : vector<8x128xf32> to vector<8x32xf32>
    %127 = arith.truncf %126 : vector<8x32xf32> to vector<8x32xbf16>
    %128 = vector.extract_strided_slice %104 {offsets = [0, 32], sizes = [8, 32], strides = [1, 1]} : vector<8x128xbf16> to vector<8x32xbf16>
    %cst_33 = arith.constant dense<0.000000e+00> : vector<8x8xf32>
    %129 = tpu.matmul %127, %128, %cst_33 {dimension_numbers = #tpu.dot_dimension_numbers<[1], [1], [0], [0], [0, 0, 1, 0], [], []>} : vector<8x32xbf16>, vector<8x32xbf16>, vector<8x8xf32> -> vector<8x8xf32>
    %130 = vector.broadcast %106 : vector<1x8xf32> to vector<8x8xf32>
    %131 = arith.addf %129, %130 : vector<8x8xf32>
    %cst_34 = arith.constant dense<0xFF800000> : vector<8xf32>
    %132 = vector.multi_reduction <maximumf>, %131, %cst_34 [1] : vector<8x8xf32> to vector<8xf32>
    %133 = vector.shape_cast %132 : vector<8xf32> to vector<8x1xf32>
    %134 = vector.broadcast %133 : vector<8x1xf32> to vector<8x8xf32>
    %135 = arith.subf %131, %134 : vector<8x8xf32>
    %136 = math.exp %135 : vector<8x8xf32>
    %cst_35 = arith.constant dense<0.000000e+00> : vector<8xf32>
    %137 = vector.multi_reduction <add>, %136, %cst_35 [1] : vector<8x8xf32> to vector<8xf32>
    %138 = vector.shape_cast %137 : vector<8xf32> to vector<8x1xf32>
    %139 = tpu.reciprocal %138 {approx = true} : vector<8x1xf32> -> vector<8x1xf32>
    %140 = vector.broadcast %139 : vector<8x1xf32> to vector<8x8xf32>
    %141 = arith.mulf %136, %140 : vector<8x8xf32>
    %142 = arith.truncf %141 : vector<8x8xf32> to vector<8x8xbf16>
    %143 = vector.extract_strided_slice %105 {offsets = [0, 32], sizes = [8, 32], strides = [1, 1]} : vector<8x128xbf16> to vector<8x32xbf16>
    %cst_36 = arith.constant dense<0.000000e+00> : vector<8x32xf32>
    %144 = tpu.matmul %142, %143, %cst_36 {dimension_numbers = #tpu.dot_dimension_numbers<[1], [0], [0], [1], [0, 0, 1, 1], [], []>} : vector<8x8xbf16>, vector<8x32xbf16>, vector<8x32xf32> -> vector<8x32xf32>
    %145 = vector.extract_strided_slice %103 {offsets = [0, 64], sizes = [8, 32], strides = [1, 1]} : vector<8x128xf32> to vector<8x32xf32>
    %146 = arith.truncf %145 : vector<8x32xf32> to vector<8x32xbf16>
    %147 = vector.extract_strided_slice %104 {offsets = [0, 64], sizes = [8, 32], strides = [1, 1]} : vector<8x128xbf16> to vector<8x32xbf16>
    %cst_37 = arith.constant dense<0.000000e+00> : vector<8x8xf32>
    %148 = tpu.matmul %146, %147, %cst_37 {dimension_numbers = #tpu.dot_dimension_numbers<[1], [1], [0], [0], [0, 0, 1, 0], [], []>} : vector<8x32xbf16>, vector<8x32xbf16>, vector<8x8xf32> -> vector<8x8xf32>
    %149 = vector.broadcast %106 : vector<1x8xf32> to vector<8x8xf32>
    %150 = arith.addf %148, %149 : vector<8x8xf32>
    %cst_38 = arith.constant dense<0xFF800000> : vector<8xf32>
    %151 = vector.multi_reduction <maximumf>, %150, %cst_38 [1] : vector<8x8xf32> to vector<8xf32>
    %152 = vector.shape_cast %151 : vector<8xf32> to vector<8x1xf32>
    %153 = vector.broadcast %152 : vector<8x1xf32> to vector<8x8xf32>
    %154 = arith.subf %150, %153 : vector<8x8xf32>
    %155 = math.exp %154 : vector<8x8xf32>
    %cst_39 = arith.constant dense<0.000000e+00> : vector<8xf32>
    %156 = vector.multi_reduction <add>, %155, %cst_39 [1] : vector<8x8xf32> to vector<8xf32>
    %157 = vector.shape_cast %156 : vector<8xf32> to vector<8x1xf32>
    %158 = tpu.reciprocal %157 {approx = true} : vector<8x1xf32> -> vector<8x1xf32>
    %159 = vector.broadcast %158 : vector<8x1xf32> to vector<8x8xf32>
    %160 = arith.mulf %155, %159 : vector<8x8xf32>
    %161 = arith.truncf %160 : vector<8x8xf32> to vector<8x8xbf16>
    %162 = vector.extract_strided_slice %105 {offsets = [0, 64], sizes = [8, 32], strides = [1, 1]} : vector<8x128xbf16> to vector<8x32xbf16>
    %cst_40 = arith.constant dense<0.000000e+00> : vector<8x32xf32>
    %163 = tpu.matmul %161, %162, %cst_40 {dimension_numbers = #tpu.dot_dimension_numbers<[1], [0], [0], [1], [0, 0, 1, 1], [], []>} : vector<8x8xbf16>, vector<8x32xbf16>, vector<8x32xf32> -> vector<8x32xf32>
    %164 = vector.extract_strided_slice %103 {offsets = [0, 96], sizes = [8, 32], strides = [1, 1]} : vector<8x128xf32> to vector<8x32xf32>
    %165 = arith.truncf %164 : vector<8x32xf32> to vector<8x32xbf16>
    %166 = vector.extract_strided_slice %104 {offsets = [0, 96], sizes = [8, 32], strides = [1, 1]} : vector<8x128xbf16> to vector<8x32xbf16>
    %cst_41 = arith.constant dense<0.000000e+00> : vector<8x8xf32>
    %167 = tpu.matmul %165, %166, %cst_41 {dimension_numbers = #tpu.dot_dimension_numbers<[1], [1], [0], [0], [0, 0, 1, 0], [], []>} : vector<8x32xbf16>, vector<8x32xbf16>, vector<8x8xf32> -> vector<8x8xf32>
    %168 = vector.broadcast %106 : vector<1x8xf32> to vector<8x8xf32>
    %169 = arith.addf %167, %168 : vector<8x8xf32>
    %cst_42 = arith.constant dense<0xFF800000> : vector<8xf32>
    %170 = vector.multi_reduction <maximumf>, %169, %cst_42 [1] : vector<8x8xf32> to vector<8xf32>
    %171 = vector.shape_cast %170 : vector<8xf32> to vector<8x1xf32>
    %172 = vector.broadcast %171 : vector<8x1xf32> to vector<8x8xf32>
    %173 = arith.subf %169, %172 : vector<8x8xf32>
    %174 = math.exp %173 : vector<8x8xf32>
    %cst_43 = arith.constant dense<0.000000e+00> : vector<8xf32>
    %175 = vector.multi_reduction <add>, %174, %cst_43 [1] : vector<8x8xf32> to vector<8xf32>
    %176 = vector.shape_cast %175 : vector<8xf32> to vector<8x1xf32>
    %177 = tpu.reciprocal %176 {approx = true} : vector<8x1xf32> -> vector<8x1xf32>
    %178 = vector.broadcast %177 : vector<8x1xf32> to vector<8x8xf32>
    %179 = arith.mulf %174, %178 : vector<8x8xf32>
    %180 = arith.truncf %179 : vector<8x8xf32> to vector<8x8xbf16>
    %181 = vector.extract_strided_slice %105 {offsets = [0, 96], sizes = [8, 32], strides = [1, 1]} : vector<8x128xbf16> to vector<8x32xbf16>
    %cst_44 = arith.constant dense<0.000000e+00> : vector<8x32xf32>
    %182 = tpu.matmul %180, %181, %cst_44 {dimension_numbers = #tpu.dot_dimension_numbers<[1], [0], [0], [1], [0, 0, 1, 1], [], []>} : vector<8x8xbf16>, vector<8x32xbf16>, vector<8x32xf32> -> vector<8x32xf32>
    %183 = tpu.concatenate %125, %144, %163, %182 in 1 : vector<8x32xf32>, vector<8x32xf32>, vector<8x32xf32>, vector<8x32xf32> -> vector<8x128xf32>
    %184 = tpu.concatenate %102, %183 in 0 : vector<8x128xf32>, vector<8x128xf32> -> vector<16x128xf32>
    %185 = arith.truncf %184 : vector<16x128xf32> to vector<16x128xbf16>
    %c0_45 = arith.constant 0 : index
    %c0_46 = arith.constant 0 : index
    %c0_47 = arith.constant 0 : index
    %186 = vector.load %arg7[%c0_45, %c0_46, %c0_47] : memref<1x128x128xbf16, #tpu.memory_space<vmem>>, vector<1x128x128xbf16>
    %187 = vector.shape_cast %186 : vector<1x128x128xbf16> to vector<128x128xbf16>
    %cst_48 = arith.constant dense<0.000000e+00> : vector<16x128xf32>
    %188 = tpu.matmul %185, %187, %cst_48 {dimension_numbers = #tpu.dot_dimension_numbers<[1], [0], [0], [1], [0, 0, 1, 1], [], []>} : vector<16x128xbf16>, vector<128x128xbf16>, vector<16x128xf32> -> vector<16x128xf32>
    %c0_49 = arith.constant 0 : index
    %c0_50 = arith.constant 0 : index
    %c0_51 = arith.constant 0 : index
    %189 = vector.load %arg8[%c0_49, %c0_50, %c0_51] : memref<1x1x128xf32, #tpu.memory_space<vmem>>, vector<1x1x128xf32>
    %190 = vector.shape_cast %189 : vector<1x1x128xf32> to vector<1x128xf32>
    %191 = vector.broadcast %190 : vector<1x128xf32> to vector<16x128xf32>
    %192 = arith.addf %188, %191 : vector<16x128xf32>
    %193 = arith.addf %5, %192 : vector<16x128xf32>
    %c0_52 = arith.constant 0 : index
    %c0_53 = arith.constant 0 : index
    %c0_54 = arith.constant 0 : index
    %194 = vector.load %arg9[%c0_52, %c0_53, %c0_54] : memref<1x1x128xf32, #tpu.memory_space<vmem>>, vector<1x1x128xf32>
    %195 = vector.shape_cast %194 : vector<1x1x128xf32> to vector<1x128xf32>
    %c0_55 = arith.constant 0 : index
    %c0_56 = arith.constant 0 : index
    %c0_57 = arith.constant 0 : index
    %196 = vector.load %arg10[%c0_55, %c0_56, %c0_57] : memref<1x1x128xf32, #tpu.memory_space<vmem>>, vector<1x1x128xf32>
    %197 = vector.shape_cast %196 : vector<1x1x128xf32> to vector<1x128xf32>
    %cst_58 = arith.constant dense<0.000000e+00> : vector<16xf32>
    %198 = vector.multi_reduction <add>, %193, %cst_58 [1] : vector<16x128xf32> to vector<16xf32>
    %199 = vector.shape_cast %198 : vector<16xf32> to vector<16x1xf32>
    %cst_59 = arith.constant 1.280000e+02 : f32
    %200 = vector.broadcast %cst_59 : f32 to vector<16x1xf32>
    %201 = arith.divf %199, %200 : vector<16x1xf32>
    %202 = vector.broadcast %201 : vector<16x1xf32> to vector<16x128xf32>
    %203 = arith.subf %193, %202 : vector<16x128xf32>
    %204 = arith.mulf %203, %203 : vector<16x128xf32>
    %cst_60 = arith.constant dense<0.000000e+00> : vector<16xf32>
    %205 = vector.multi_reduction <add>, %204, %cst_60 [1] : vector<16x128xf32> to vector<16xf32>
    %206 = vector.shape_cast %205 : vector<16xf32> to vector<16x1xf32>
    %cst_61 = arith.constant 1.280000e+02 : f32
    %207 = vector.broadcast %cst_61 : f32 to vector<16x1xf32>
    %208 = arith.divf %206, %207 : vector<16x1xf32>
    %209 = vector.broadcast %201 : vector<16x1xf32> to vector<16x128xf32>
    %210 = arith.subf %193, %209 : vector<16x128xf32>
    %211 = vector.broadcast %1 : f32 to vector<16x1xf32>
    %212 = arith.addf %208, %211 : vector<16x1xf32>
    %213 = math.rsqrt %212 : vector<16x1xf32>
    %214 = vector.broadcast %213 : vector<16x1xf32> to vector<16x128xf32>
    %215 = arith.mulf %210, %214 : vector<16x128xf32>
    %216 = vector.broadcast %195 : vector<1x128xf32> to vector<16x128xf32>
    %217 = arith.mulf %215, %216 : vector<16x128xf32>
    %218 = vector.broadcast %197 : vector<1x128xf32> to vector<16x128xf32>
    %219 = arith.addf %217, %218 : vector<16x128xf32>
    %220 = arith.truncf %219 : vector<16x128xf32> to vector<16x128xbf16>
    %c0_62 = arith.constant 0 : index
    %c0_63 = arith.constant 0 : index
    %c0_64 = arith.constant 0 : index
    %221 = vector.load %arg11[%c0_62, %c0_63, %c0_64] : memref<1x128x256xbf16, #tpu.memory_space<vmem>>, vector<1x128x256xbf16>
    %222 = vector.shape_cast %221 : vector<1x128x256xbf16> to vector<128x256xbf16>
    %cst_65 = arith.constant dense<0.000000e+00> : vector<16x256xf32>
    %223 = tpu.matmul %220, %222, %cst_65 {dimension_numbers = #tpu.dot_dimension_numbers<[1], [0], [0], [1], [0, 0, 1, 1], [], []>} : vector<16x128xbf16>, vector<128x256xbf16>, vector<16x256xf32> -> vector<16x256xf32>
    %c0_66 = arith.constant 0 : index
    %c0_67 = arith.constant 0 : index
    %c0_68 = arith.constant 0 : index
    %224 = vector.load %arg12[%c0_66, %c0_67, %c0_68] : memref<1x1x256xf32, #tpu.memory_space<vmem>>, vector<1x1x256xf32>
    %225 = vector.shape_cast %224 : vector<1x1x256xf32> to vector<1x256xf32>
    %226 = vector.broadcast %225 : vector<1x256xf32> to vector<16x256xf32>
    %227 = arith.addf %223, %226 : vector<16x256xf32>
    %cst_69 = arith.constant 5.000000e-01 : f32
    %228 = vector.broadcast %cst_69 : f32 to vector<16x256xf32>
    %229 = arith.mulf %228, %227 : vector<16x256xf32>
    %cst_70 = arith.constant 0.707106769 : f32
    %230 = vector.broadcast %cst_70 : f32 to vector<16x256xf32>
    %231 = arith.mulf %227, %230 : vector<16x256xf32>
    %232 = math.absf %231 : vector<16x256xf32>
    %cst_71 = arith.constant 0.327591091 : f32
    %233 = vector.broadcast %cst_71 : f32 to vector<16x256xf32>
    %234 = arith.mulf %233, %232 : vector<16x256xf32>
    %cst_72 = arith.constant 1.000000e+00 : f32
    %235 = vector.broadcast %cst_72 : f32 to vector<16x256xf32>
    %236 = arith.addf %235, %234 : vector<16x256xf32>
    %cst_73 = arith.constant 1.000000e+00 : f32
    %237 = vector.broadcast %cst_73 : f32 to vector<16x256xf32>
    %238 = arith.divf %237, %236 : vector<16x256xf32>
    %cst_74 = arith.constant 1.06140542 : f32
    %239 = vector.broadcast %cst_74 : f32 to vector<16x256xf32>
    %240 = arith.mulf %239, %238 : vector<16x256xf32>
    %cst_75 = arith.constant -1.45315206 : f32
    %241 = vector.broadcast %cst_75 : f32 to vector<16x256xf32>
    %242 = arith.addf %240, %241 : vector<16x256xf32>
    %243 = arith.mulf %242, %238 : vector<16x256xf32>
    %cst_76 = arith.constant 1.42141378 : f32
    %244 = vector.broadcast %cst_76 : f32 to vector<16x256xf32>
    %245 = arith.addf %243, %244 : vector<16x256xf32>
    %246 = arith.mulf %245, %238 : vector<16x256xf32>
    %cst_77 = arith.constant -0.284496725 : f32
    %247 = vector.broadcast %cst_77 : f32 to vector<16x256xf32>
    %248 = arith.addf %246, %247 : vector<16x256xf32>
    %249 = arith.mulf %248, %238 : vector<16x256xf32>
    %cst_78 = arith.constant 0.254829586 : f32
    %250 = vector.broadcast %cst_78 : f32 to vector<16x256xf32>
    %251 = arith.addf %249, %250 : vector<16x256xf32>
    %252 = arith.mulf %251, %238 : vector<16x256xf32>
    %cst_79 = arith.constant 0.000000e+00 : f32
    %253 = vector.broadcast %cst_79 : f32 to vector<16x256xf32>
    %254 = arith.subf %253, %232 : vector<16x256xf32>
    %255 = arith.mulf %254, %232 : vector<16x256xf32>
    %256 = math.exp %255 : vector<16x256xf32>
    %257 = arith.mulf %252, %256 : vector<16x256xf32>
    %cst_80 = arith.constant 1.000000e+00 : f32
    %258 = vector.broadcast %cst_80 : f32 to vector<16x256xf32>
    %259 = arith.subf %258, %257 : vector<16x256xf32>
    %cst_81 = arith.constant 0.000000e+00 : f32
    %260 = vector.broadcast %cst_81 : f32 to vector<16x256xf32>
    %261 = arith.cmpf olt, %231, %260 : vector<16x256xf32>
    %cst_82 = arith.constant 0.000000e+00 : f32
    %262 = vector.broadcast %cst_82 : f32 to vector<16x256xf32>
    %263 = arith.subf %262, %259 : vector<16x256xf32>
    %264 = arith.select %261, %263, %259 : vector<16x256xi1>, vector<16x256xf32>
    %cst_83 = arith.constant 1.000000e+00 : f32
    %265 = vector.broadcast %cst_83 : f32 to vector<16x256xf32>
    %266 = arith.addf %265, %264 : vector<16x256xf32>
    %267 = arith.mulf %229, %266 : vector<16x256xf32>
    %cst_84 = arith.constant 0.000000e+00 : f32
    %268 = vector.broadcast %cst_84 : f32 to vector<16x256xf32>
    %269 = arith.maximumf %227, %268 : vector<16x256xf32>
    %270 = arith.select %0, %267, %269 : vector<16x256xf32>
    %271 = arith.truncf %270 : vector<16x256xf32> to vector<16x256xbf16>
    %c0_85 = arith.constant 0 : index
    %c0_86 = arith.constant 0 : index
    %c0_87 = arith.constant 0 : index
    %272 = vector.load %arg13[%c0_85, %c0_86, %c0_87] : memref<1x256x128xbf16, #tpu.memory_space<vmem>>, vector<1x256x128xbf16>
    %273 = vector.shape_cast %272 : vector<1x256x128xbf16> to vector<256x128xbf16>
    %cst_88 = arith.constant dense<0.000000e+00> : vector<16x128xf32>
    %274 = tpu.matmul %271, %273, %cst_88 {dimension_numbers = #tpu.dot_dimension_numbers<[1], [0], [0], [1], [0, 0, 1, 1], [], []>} : vector<16x256xbf16>, vector<256x128xbf16>, vector<16x128xf32> -> vector<16x128xf32>
    %c0_89 = arith.constant 0 : index
    %c0_90 = arith.constant 0 : index
    %c0_91 = arith.constant 0 : index
    %275 = vector.load %arg14[%c0_89, %c0_90, %c0_91] : memref<1x1x128xf32, #tpu.memory_space<vmem>>, vector<1x1x128xf32>
    %276 = vector.shape_cast %275 : vector<1x1x128xf32> to vector<1x128xf32>
    %277 = vector.broadcast %276 : vector<1x128xf32> to vector<16x128xf32>
    %278 = arith.addf %274, %277 : vector<16x128xf32>
    %279 = arith.addf %219, %278 : vector<16x128xf32>
    %c0_92 = arith.constant 0 : index
    %c0_93 = arith.constant 0 : index
    %c0_94 = arith.constant 0 : index
    %280 = vector.load %arg15[%c0_92, %c0_93, %c0_94] : memref<1x1x128xf32, #tpu.memory_space<vmem>>, vector<1x1x128xf32>
    %281 = vector.shape_cast %280 : vector<1x1x128xf32> to vector<1x128xf32>
    %c0_95 = arith.constant 0 : index
    %c0_96 = arith.constant 0 : index
    %c0_97 = arith.constant 0 : index
    %282 = vector.load %arg16[%c0_95, %c0_96, %c0_97] : memref<1x1x128xf32, #tpu.memory_space<vmem>>, vector<1x1x128xf32>
    %283 = vector.shape_cast %282 : vector<1x1x128xf32> to vector<1x128xf32>
    %cst_98 = arith.constant dense<0.000000e+00> : vector<16xf32>
    %284 = vector.multi_reduction <add>, %279, %cst_98 [1] : vector<16x128xf32> to vector<16xf32>
    %285 = vector.shape_cast %284 : vector<16xf32> to vector<16x1xf32>
    %cst_99 = arith.constant 1.280000e+02 : f32
    %286 = vector.broadcast %cst_99 : f32 to vector<16x1xf32>
    %287 = arith.divf %285, %286 : vector<16x1xf32>
    %288 = vector.broadcast %287 : vector<16x1xf32> to vector<16x128xf32>
    %289 = arith.subf %279, %288 : vector<16x128xf32>
    %290 = arith.mulf %289, %289 : vector<16x128xf32>
    %cst_100 = arith.constant dense<0.000000e+00> : vector<16xf32>
    %291 = vector.multi_reduction <add>, %290, %cst_100 [1] : vector<16x128xf32> to vector<16xf32>
    %292 = vector.shape_cast %291 : vector<16xf32> to vector<16x1xf32>
    %cst_101 = arith.constant 1.280000e+02 : f32
    %293 = vector.broadcast %cst_101 : f32 to vector<16x1xf32>
    %294 = arith.divf %292, %293 : vector<16x1xf32>
    %295 = vector.broadcast %287 : vector<16x1xf32> to vector<16x128xf32>
    %296 = arith.subf %279, %295 : vector<16x128xf32>
    %297 = vector.broadcast %1 : f32 to vector<16x1xf32>
    %298 = arith.addf %294, %297 : vector<16x1xf32>
    %299 = math.rsqrt %298 : vector<16x1xf32>
    %300 = vector.broadcast %299 : vector<16x1xf32> to vector<16x128xf32>
    %301 = arith.mulf %296, %300 : vector<16x128xf32>
    %302 = vector.broadcast %281 : vector<1x128xf32> to vector<16x128xf32>
    %303 = arith.mulf %301, %302 : vector<16x128xf32>
    %304 = vector.broadcast %283 : vector<1x128xf32> to vector<16x128xf32>
    %305 = arith.addf %303, %304 : vector<16x128xf32>
    %c0_102 = arith.constant 0 : index
    %c0_103 = arith.constant 0 : index
    %306 = vector.load %arg17[%c0_102, %c0_103] : memref<16x128xf32, #tpu.memory_space<vmem>>, vector<16x128xf32>
    tpu.vector_store %arg17[%c0_102, %c0_103], %305 {strides = array<i32>} : memref<16x128xf32, #tpu.memory_space<vmem>>, vector<16x128xf32>,
    return
  }
  func.func @transform_0(%arg0: i32) -> (i32, i32) {
    %c0_i32 = arith.constant 0 : i32
    %c0_i32_0 = arith.constant 0 : i32
    %c0_i32_1 = arith.constant 0 : i32
    return %c0_i32, %c0_i32_0 : i32, i32
  }
  func.func @transform_1(%arg0: i32) -> (i32, i32) {
    %c0_i32 = arith.constant 0 : i32
    %c0_i32_0 = arith.constant 0 : i32
    %c0_i32_1 = arith.constant 0 : i32
    return %c0_i32, %c0_i32_0 : i32, i32
  }
  func.func @transform_2(%arg0: i32) -> (i32, i32) {
    %c0_i32 = arith.constant 0 : i32
    %c0_i32_0 = arith.constant 0 : i32
    %c0_i32_1 = arith.constant 0 : i32
    return %c0_i32, %c0_i32_0 : i32, i32
  }
  func.func @transform_3(%arg0: i32) -> (i32, i32) {
    %c0_i32 = arith.constant 0 : i32
    %c0_i32_0 = arith.constant 0 : i32
    %c0_i32_1 = arith.constant 0 : i32
    return %c0_i32, %c0_i32_0 : i32, i32
  }
  func.func @transform_4(%arg0: i32) -> (i32, i32, i32) {
    %c0_i32 = arith.constant 0 : i32
    %c0_i32_0 = arith.constant 0 : i32
    %c0_i32_1 = arith.constant 0 : i32
    return %arg0, %c0_i32, %c0_i32_0 : i32, i32, i32
  }
  func.func @transform_5(%arg0: i32) -> (i32, i32, i32) {
    %c0_i32 = arith.constant 0 : i32
    %c0_i32_0 = arith.constant 0 : i32
    %c0_i32_1 = arith.constant 0 : i32
    return %arg0, %c0_i32, %c0_i32_0 : i32, i32, i32
  }
  func.func @transform_6(%arg0: i32) -> (i32, i32, i32) {
    %c0_i32 = arith.constant 0 : i32
    %c0_i32_0 = arith.constant 0 : i32
    %c0_i32_1 = arith.constant 0 : i32
    return %arg0, %c0_i32, %c0_i32_0 : i32, i32, i32
  }
  func.func @transform_7(%arg0: i32) -> (i32, i32, i32) {
    %c0_i32 = arith.constant 0 : i32
    %c0_i32_0 = arith.constant 0 : i32
    %c0_i32_1 = arith.constant 0 : i32
    return %arg0, %c0_i32, %c0_i32_0 : i32, i32, i32
  }
  func.func @transform_8(%arg0: i32) -> (i32, i32, i32) {
    %c0_i32 = arith.constant 0 : i32
    %c0_i32_0 = arith.constant 0 : i32
    %c0_i32_1 = arith.constant 0 : i32
    return %arg0, %c0_i32, %c0_i32_0 : i32, i32, i32
  }
  func.func @transform_9(%arg0: i32) -> (i32, i32, i32) {
    %c0_i32 = arith.constant 0 : i32
    %c0_i32_0 = arith.constant 0 : i32
    %c0_i32_1 = arith.constant 0 : i32
    return %arg0, %c0_i32, %c0_i32_0 : i32, i32, i32
  }
  func.func @transform_10(%arg0: i32) -> (i32, i32, i32) {
    %c0_i32 = arith.constant 0 : i32
    %c0_i32_0 = arith.constant 0 : i32
    %c0_i32_1 = arith.constant 0 : i32
    return %arg0, %c0_i32, %c0_i32_0 : i32, i32, i32
  }
  func.func @transform_11(%arg0: i32) -> (i32, i32, i32) {
    %c0_i32 = arith.constant 0 : i32
    %c0_i32_0 = arith.constant 0 : i32
    %c0_i32_1 = arith.constant 0 : i32
    return %arg0, %c0_i32, %c0_i32_0 : i32, i32, i32
  }
  func.func @transform_12(%arg0: i32) -> (i32, i32, i32) {
    %c0_i32 = arith.constant 0 : i32
    %c0_i32_0 = arith.constant 0 : i32
    %c0_i32_1 = arith.constant 0 : i32
    return %arg0, %c0_i32, %c0_i32_0 : i32, i32, i32
  }
  func.func @transform_13(%arg0: i32) -> (i32, i32, i32) {
    %c0_i32 = arith.constant 0 : i32
    %c0_i32_0 = arith.constant 0 : i32
    %c0_i32_1 = arith.constant 0 : i32
    return %arg0, %c0_i32, %c0_i32_0 : i32, i32, i32
  }
  func.func @transform_14(%arg0: i32) -> (i32, i32, i32) {
    %c0_i32 = arith.constant 0 : i32
    %c0_i32_0 = arith.constant 0 : i32
    %c0_i32_1 = arith.constant 0 : i32
    return %arg0, %c0_i32, %c0_i32_0 : i32, i32, i32
  }
  func.func @transform_15(%arg0: i32) -> (i32, i32, i32) {
    %c0_i32 = arith.constant 0 : i32
    %c0_i32_0 = arith.constant 0 : i32
    %c0_i32_1 = arith.constant 0 : i32
    return %arg0, %c0_i32, %c0_i32_0 : i32, i32, i32
  }
  func.func @transform_16(%arg0: i32) -> (i32, i32) {
    %c0_i32 = arith.constant 0 : i32
    %c0_i32_0 = arith.constant 0 : i32
    %c0_i32_1 = arith.constant 0 : i32
    return %c0_i32, %c0_i32_0 : i32, i32
  }
}

</mosaic_0001>

<bundles_post_ra>
// kernel: _lambda_.1
= control target key start
LH: loop header
LB: loop body
LE: loop exit
PB: predicated region body
PF: predicated region fallthrough
CT: control target
= control target key end

     0   :  { %s3880_s0 = inlined_call_operand.vmem [shape: f32[16,128], index: 0, kind: input, shape index: {}]   ;;  %s3881_s1 = inlined_call_operand.vmem [shape: f32[2,8], index: 1, kind: input, shape index: {}]   ;;  %s3882_s2 = inlined_call_operand.vmem [shape: f32[1,128], index: 2, kind: input, shape index: {}]   ;;  %s3883_s3 = inlined_call_operand.vmem [shape: f32[1,128], index: 3, kind: input, shape index: {}]   ;;  %s3884_s4 = inlined_call_operand.hbm [shape: bf16[4,128,384], index: 4, kind: input, shape index: {}]   ;;  %s3885_s5 = inlined_call_operand.vmem [shape: f32[4,1,384], index: 5, kind: input, shape index: {}]   ;;  %s3886_s6 = inlined_call_operand.hbm [shape: bf16[4,128,128], index: 6, kind: input, shape index: {}]   ;;  %s3887_s7 = inlined_call_operand.vmem [shape: f32[4,1,128], index: 7, kind: input, shape index: {}, may-alias: {7,9,13,15}]   ;;  %s3888_s8 = inlined_call_operand.vmem [shape: f32[4,1,128], index: 8, kind: input, shape index: {}, may-alias: {8,14}]   ;;  %s3889_s9 = inlined_call_operand.vmem [shape: f32[4,1,128], index: 9, kind: input, shape index: {}, may-alias: {7,9,13,15}]   ;;  %s3890_s10 = inlined_call_operand.hbm [shape: bf16[4,128,256], index: 10, kind: input, shape index: {}]   ;;  %s3891_s11 = inlined_call_operand.vmem [shape: f32[4,1,256], index: 11, kind: input, shape index: {}]   ;;  %s3892_s12 = inlined_call_operand.hbm [shape: bf16[4,256,128], index: 12, kind: input, shape index: {}]   ;;  %s3893_s13 = inlined_call_operand.vmem [shape: f32[4,1,128], index: 13, kind: input, shape index: {}, may-alias: {7,9,13,15}]   ;;  %s3894_s14 = inlined_call_operand.vmem [shape: f32[4,1,128], index: 14, kind: input, shape index: {}, may-alias: {8,14}]   ;;  %s3895_s15 = inlined_call_operand.vmem [shape: f32[4,1,128], index: 15, kind: input, shape index: {}, may-alias: {7,9,13,15}]   ;;  %s3896_s16 = inlined_call_operand.hbm [shape: f32[16,128], index: 16, kind: output, shape index: {}]  }
   0x1   :  { %3904 = sst [smem:[#allocation19_spill]] %s3880_s0 }
   0x2   :  { %3905 = sst [smem:[#allocation20_spill]] %s3881_s1 }
   0x3   :  { %3906 = sst [smem:[#allocation21_spill]] %s3882_s2 }
   0x4   :  { %3907 = sst [smem:[#allocation22_spill]] %s3883_s3 }
   0x5   :  { %3908 = sst [smem:[#allocation23_spill]] %s3884_s4 }
   0x6   :  { %3909 = sst [smem:[#allocation24_spill]] %s3886_s6 }
   0x7   :  { %3910 = sst [smem:[#allocation25_spill]] %s3890_s10 }
   0x8   :  { %3911 = sst [smem:[#allocation26_spill]] %s3892_s12 }
   0x9   :  { %3912 = sst [smem:[#allocation27_spill]] %s3893_s13 }
   0xa   :  { %3913 = sst [smem:[#allocation28_spill]] %s3894_s14 }
   0xb   :  { %3914 = sst [smem:[#allocation29_spill]] %s3895_s15 }
   0xc   :  { %3915 = sst [smem:[#allocation30_spill]] %s3896_s16 }
   0xd   :  { %21 = vsyncpa [#allocation3], 0 }
   0xe   :  { %23 = vsyncpa [#allocation3 + $0x1], 0 }
   0xf   :  { %24 = vsyncpa [#allocation6], 0 }
  0x10   :  { %26 = vsyncpa [#allocation6 + $0x1], 0 }
  0x11   :  { %27 = vsyncpa [#allocation9], 0 }
  0x12   :  { %29 = vsyncpa [#allocation9 + $0x1], 0 }
  0x13   :  { %30 = vsyncpa [#allocation4], 0  ;;  %s3242_s21 = smov 0   ;;  %s3244_s22 = smov 0  }
  0x14   :  { %s3246_s23 = smov 0   ;;  %s3248_s24 = smov 0  }
  0x15 LB: > { %3916 = sst [smem:[#allocation15_spill]] %s3133_s22  ;;  %s3261_s25 = sadd.s32 4294967295, %s3141_s24   ;;  %s3141_s24 = sphi %s3248_s24, %s3947_s24   ;;  %s3137_s23 = sphi %s3246_s23, %s3950_s23   ;;  %s3133_s22 = sphi %s3244_s22, %s3949_s22   ;;  %s3129_s21 = sphi %s3242_s21, %s3948_s21  }
  0x16   : > { %3917 = sst [smem:[#allocation16_spill]] %s3137_s23  ;;  %s3264_s26 = sadd.s32 1, %s3141_s24  }
  0x17   : > { %3918 = sst [smem:[#allocation17_spill]] %s3264_s26  ;;  %s124_s27 = ssub.s32 %s3141_s24, %s3264_s26 }
  0x18   : > { %s127_s28 = sadd.s32 1, %s3137_s23  ;;  %p125_p0 = scmp.eq.s32.totalorder %s124_s27, 0 }
  0x19   : > { %p134_p1 = scmp.ne.s32.totalorder %s3137_s23, %s3133_s22  ;;  %p135_p2 = scmp.eq.s32.totalorder %s3141_s24, 0 }
  0x1a   : > { %p140_p3 = scmp.ne.s32.totalorder %s3133_s22, %s3129_s21  ;;  %p141_p5 = scmp.eq.s32.totalorder %s3261_s25, 0 }
  0x1b   : > { %s3274_s29 = scalar_select %p125_p0, %s3137_s23, %s127_s28  }
  0x1c   : > { %p136_p4 = por %p135_p2, %p134_p1  ;;  %p2811_p6 = scmp.lt.s32.totalorder %s3141_s24, 4 }
  0x1d   : > { %3919 = sst [smem:[#allocation18_spill]] %s3274_s29  ;;  %p3278_p7 = por %p141_p5, %p140_p3 }
  0x1e   : > { %s3283_s0 = sand.u32 1, %s3137_s23   ;;  %p3285_p8 = pnand %p2811_p6, %p136_p4 }
  0x1f   : > { %s512_s18 = sand.u32 1, %s3141_s24   ;;  %s2424_s19 = sshll.u32 %s3283_s0, 6 }
  0x20   : > { %s2715_s20 = sshll.u32 %s3141_s24, 6  ;;  %s516_s21 = scalar_lea.vmem [#allocation5], %s2424_s19 }
  0x21   : > { %s524_s27 = sshll.u32 %s516_s21, 4  ;;  %s3922_s6 = sld [smem:[#allocation24_spill]]  ;;  %s525_s27 = int_to_ptr.vmem [resolvable:$true] %s524_s27 }
  0x22   : > { %s3295_s23 = scalar_lea.sflag [#allocation6], %s512_s18  ;;  %p2951_p10 = pneg %p3285_p8 }
  0x27   : > { %s521_s26 = scalar_lea.hbm %s3922_s6, %s2715_s20  ;;  %s2954_s29 = scalar_lea.hbm %s3922_s6, 256 }
  0x28   : > { %s522_s16 = sshll.u32 %s521_s26, 4  ;;  %s523_s16 = int_to_ptr.hbm [resolvable:$true] %s522_s16 }
  0x29   : > { %s2947_s1 = sshra.s32 %s523_s16, 4  ;;  %s2948_s1 = int_to_ptr.hbm [resolvable:$true] %s2947_s1 }
  0x2a   : > { %s2949_s3 = scalar_lea.hbm %s2948_s1, 64  ;;  %p2955_p13 = scmp.lt.s32.totalorder %s2948_s1, %s3922_s6 }
  0x2b   : > { %p2950_p9 = scmp.ne.s32.totalorder %s2948_s1, %s2949_s3  ;;  %p2956_p0 = scmp.lt.s32.totalorder %s2954_s29, %s2949_s3 }
  0x2d   : > { %p2952_p11 = pnand %p2951_p10, %p2950_p9  ;;  %p2957_p1 = por %p2956_p0, %p2955_p13 }
  0x2f   : > { %p2953_p12 = pneg %p2952_p11 }
  0x31   : > { %p2958_p2 = pnand %p2957_p1, %p2953_p12 }
  0x33   : > { %2961 = shalt.err (!%p2958_p2)
}
  0x34   : > { %s3901_s26 = smov 64   ;;  %s3902_s18 = smov 4  }
  0x35   : > { %2804 = dma.hbm_to_vmem [thread:$0]  (!%p3285_p8), %s523_s16, 1024, %s525_s27, %s3295_s23, %s3901_s26, %s3901_s26, %s3902_s18  }
  0x36   : > { %p2433_p3 = scmp.ge.s32.totalorder %s3141_s24, 1  ;;  %p619_p4 = scmp.lt.s32.totalorder %s3141_s24, 5 }
  0x37   : > { %s2782_s1 = smul.u32 192, %s3283_s0  ;;  %s3924_s4 = sld [smem:[#allocation23_spill]] }
  0x38   : > { %p3317_p5 = pnand %p2433_p3, %p619_p4  ;;  %s2783_s19 = smul.u32 192, %s3141_s24 }
  0x39   : > { %s487_s28 = scalar_lea.vmem [#allocation2], %s2782_s1  ;;  %s484_s15 = scalar_lea.sflag [#allocation3], %s3283_s0 }
  0x3a   : > { %s495_s6 = sshll.u32 %s487_s28, 4  ;;  %s496_s6 = int_to_ptr.vmem [resolvable:$true] %s495_s6 }
  0x3d   : > { %s492_s20 = scalar_lea.hbm %s3924_s4, %s2783_s19  ;;  %s2984_s14 = scalar_lea.hbm %s3924_s4, 768 }
  0x3e   : > { %s493_s2 = sshll.u32 %s492_s20, 4  ;;  %s494_s2 = int_to_ptr.hbm [resolvable:$true] %s493_s2 }
  0x3f   : > { %s2977_s16 = sshra.s32 %s494_s2, 4  ;;  %s2978_s16 = int_to_ptr.hbm [resolvable:$true] %s2977_s16 }
  0x40   : > { %s2979_s27 = scalar_lea.hbm %s2978_s16, 192  ;;  %p2985_p12 = scmp.lt.s32.totalorder %s2978_s16, %s3924_s4 }
  0x41   : > { %p2980_p6 = scmp.ne.s32.totalorder %s2978_s16, %s2979_s27  ;;  %p2986_p13 = scmp.lt.s32.totalorder %s2984_s14, %s2979_s27 }
  0x43   : > { %p2982_p9 = pnand %p2980_p6, %p2951_p10  ;;  %p2987_p0 = por %p2986_p13, %p2985_p12 }
  0x45   : > { %p2983_p11 = pneg %p2982_p9 }
  0x47   : > { %p2988_p1 = pnand %p2987_p0, %p2983_p11 }
  0x49   : > { %2991 = shalt.err (!%p2988_p1)
}
  0x4a   : > { %s3145_s1 = smov 192   ;;  %s3146_s29 = smov 12  }
  0x4b   : > { %2801 = dma.hbm_to_vmem [thread:$0]  (!%p3285_p8), %s494_s2, 3072, %s496_s6, %s484_s15, %s3145_s1, %s3145_s1, %s3146_s29  }
  0x4c   : > { %s2427_s20 = sshll.u32 %s3283_s0, 7  ;;  %s2716_s28 = sshll.u32 %s3141_s24, 7 }
  0x4d   : > { %s3925_s10 = sld [smem:[#allocation25_spill]]  ;;  %s556_s16 = scalar_lea.vmem [#allocation7], %s2427_s20 }
  0x4e   : > { %s564_s14 = sshll.u32 %s556_s16, 4  ;;  %s565_s14 = int_to_ptr.vmem [resolvable:$true] %s564_s14 }
  0x53   : > { %s561_s13 = scalar_lea.hbm %s3925_s10, %s2716_s28  ;;  %s3014_s15 = scalar_lea.hbm %s3925_s10, 512 }
  0x54   : > { %s562_s21 = sshll.u32 %s561_s13, 4  ;;  %s563_s21 = int_to_ptr.hbm [resolvable:$true] %s562_s21 }
  0x55   : > { %s3007_s27 = sshra.s32 %s563_s21, 4  ;;  %s3008_s27 = int_to_ptr.hbm [resolvable:$true] %s3007_s27 }
  0x56   : > { %s3009_s19 = scalar_lea.hbm %s3008_s27, 128  ;;  %p3015_p6 = scmp.lt.s32.totalorder %s3008_s27, %s3925_s10 }
  0x57   : > { %p3010_p2 = scmp.ne.s32.totalorder %s3008_s27, %s3009_s19  ;;  %p3016_p9 = scmp.lt.s32.totalorder %s3014_s15, %s3009_s19 }
  0x59   : > { %p3012_p3 = pnand %p3010_p2, %p2951_p10  ;;  %p3017_p11 = por %p3016_p9, %p3015_p6 }
  0x5b   : > { %p3013_p4 = pneg %p3012_p3 }
  0x5d   : > { %p3018_p12 = pnand %p3017_p11, %p3013_p4 }
  0x5f   : > { %3021 = shalt.err (!%p3018_p12)
}
  0x60   : > { %s3147_s13 = smov 128   ;;  %s3148_s29 = smov 8  }
  0x61   : > { %2807 = dma.hbm_to_vmem [thread:$0]  (!%p3285_p8), %s563_s21, 2048, %s565_s14, %s3295_s23, %s3147_s13, %s3147_s13, %s3148_s29  }
  0x62   : > { %s3926_s12 = sld [smem:[#allocation26_spill]]  ;;  %s585_s2 = scalar_lea.vmem [#allocation8], %s2427_s20 }
  0x63   : > { %s593_s6 = sshll.u32 %s585_s2, 4  ;;  %s582_s27 = scalar_lea.sflag [#allocation9], %s3283_s0  ;;  %s594_s6 = int_to_ptr.vmem [resolvable:$true] %s593_s6 }
  0x68   : > { %s590_s16 = scalar_lea.hbm %s3926_s12, %s2716_s28  ;;  %s3044_s21 = scalar_lea.hbm %s3926_s12, 512 }
  0x69   : > { %s591_s24 = sshll.u32 %s590_s16, 4  ;;  %s592_s24 = int_to_ptr.hbm [resolvable:$true] %s591_s24 }
  0x6a   : > { %s3037_s19 = sshra.s32 %s592_s24, 4  ;;  %s3038_s19 = int_to_ptr.hbm [resolvable:$true] %s3037_s19 }
  0x6b   : > { %s3039_s15 = scalar_lea.hbm %s3038_s19, 128  ;;  %p3045_p2 = scmp.lt.s32.totalorder %s3038_s19, %s3926_s12 }
  0x6c   : > { %p3040_p13 = scmp.ne.s32.totalorder %s3038_s19, %s3039_s15  ;;  %p3046_p3 = scmp.lt.s32.totalorder %s3044_s21, %s3039_s15 }
  0x6e   : > { %p3042_p0 = pnand %p3040_p13, %p2951_p10  ;;  %p3047_p4 = por %p3046_p3, %p3045_p2 }
  0x70   : > { %p3043_p1 = pneg %p3042_p0 }
  0x72   : > { %p3048_p6 = pnand %p3047_p4, %p3043_p1 }
  0x74   : > { %3051 = shalt.err (!%p3048_p6)
}
  0x75   : > { %s3927_s0 = smov 4   ;;  %s3928_s20 = smov 64  }
  0x76   : > { %2810 = dma.hbm_to_vmem [thread:$0]  (!%p3285_p8), %s592_s24, 2048, %s594_s6, %s582_s27, %s3928_s20, %s3928_s20, %s3927_s0  }
  0x77   : > { %623 = sbr.rel (%p3317_p5) target bundleno = 2806 (0xaf6), region = 84  ;;  %s625_s13 = sand.u32 (!%p3317_p5), 1, %s3133_s22  }
  0x78   : > { %s2784_s29 = smul.u32 (!%p3317_p5), 192, %s625_s13  ;;  %s626_s26 = scalar_lea.sflag (!%p3317_p5), [#allocation3], %s625_s13 }
  0x7a   : > { %s3375_s18 = scalar_lea.vmem (!%p3317_p5), [#allocation2], %s2784_s29 }
  0x7c   : > { %3112 = dma.done.wait (%p3278_p7), %s626_s26, 3072  }
  0x7d   : > { %3114 = vsyncadd (%p3278_p7), %s626_s26, 4294964224  ;;  %s635_s17 = sand.u32 1, %s3261_s25   ;;  %s2434_s16 = sshll.u32 %s625_s13, 6 }
  0x7e   : > { %s636_s2 = scalar_lea.sflag [#allocation6], %s635_s17  ;;  %s3382_s6 = scalar_lea.vmem [#allocation5], %s2434_s16 }
  0x7f   : > { %3116 = dma.done.wait (%p3278_p7), %s636_s2, 3072  }
  0x80   : > { %3118 = vsyncadd (%p3278_p7), %s636_s2, 4294964224  ;;  %s2435_s3 = sshll.u32 %s625_s13, 7  ;;  %s656_s27 = scalar_lea.sflag [#allocation9], %s625_s13 }
  0x81   : > { %s3388_s24 = scalar_lea.vmem [#allocation7], %s2435_s3  ;;  %s3390_s19 = scalar_lea.vmem [#allocation8], %s2435_s3 }
  0x82   : > { %3120 = dma.done.wait (%p3278_p7), %s656_s27, 2048  }
  0x83   : > { %3122 = vsyncadd (%p3278_p7), %s656_s27, 4294965248  ;;  %p745_p8 = scmp.lt.s32.totalorder %s3261_s25, 3  ;;  %p772_p10 = scmp.lt.s32.totalorder %s3261_s25, 2 }
  0x84   : > { %s3929_s14 = sld [smem:[#allocation27_spill]]  ;;  %p2438_p7 = scmp.ne.s32.totalorder %s3261_s25, 0 }
  0x85   : > { %s3399_s15 = scalar_select %p745_p8, %s3261_s25, 3 }
  0x86   : > { %s3403_s1 = scalar_select %p772_p10, 1e-12, 1e-05 }
  0x87   : > { %s2785_s30 = smul.u32 3, %s3399_s15  ;;  %s2437_s3 = sshll.u32 %s3399_s15, 1 }
  0x88   : > { %s3427_s10 = scalar_lea.vmem %s3891_s11, %s2437_s3  ;;  %s3930_s12 = sld [smem:[#allocation28_spill]] }
  0x89   : > { %s3421_s2 = scalar_lea.vmem %s3885_s5, %s2785_s30  ;;  %s3931_s22 = sld [smem:[#allocation29_spill]] }
  0x8a   : > { %s764_s28 = scalar_lea.vmem %s3929_s14, %s3399_s15  ;;  %s3932_s4 = sld [smem:[#allocation19_spill]] (!%p2438_p7) }
  0x8b   : > { %777 = sbr.rel (%p2438_p7) target bundleno = 420 (0x1a4), region = 104  ;;  %s3933_s14 = sld [smem:[#allocation21_spill]] (!%p2438_p7) }
  0x8c   : > { %s3934_s23 = sld [smem:[#allocation22_spill]] (!%p2438_p7) }
  0x8e   : > { %s767_s13 = scalar_lea.vmem %s3930_s12, %s3399_s15 }
  0x8f   : > { %s770_s17 = scalar_lea.vmem %s3931_s22, %s3399_s15 }
  0x90   : > { %v778_v0 = vld [vmem:[%s3932_s4] sm:$0xff]  ;;  %v779_v1 = vld [vmem:[%s3932_s4 + $0x8] sm:$0xff]  ;;  %v3149_v2 = vmov 128.0  }
  0x91   : > { %782 = vadd.xlane.f32.xlu0 %v778_v0  ;;  %2862 = vrcp.f32 %v3149_v2  ;;  %v2860_v31 = vld [vmem:[%s3933_s14] ss:$0 sm:$0xff] }
  0x92   : > { %v2861_v34 = vld [vmem:[%s3934_s23] ss:$0 sm:$0xff] }
  0x97   : > { %v2863_v3 = vpop.eup %2862 }
  0x98   : > { %v787_v4 = vmul.f32 128.0, %v2863_v3  ;;  %vm791_vm0 = vweird.f32 %v2863_v3 }
  0x99   : > { %784 = vadd.xlane.f32.xlu0 %v779_v1 }
  0x9a   : > { %v788_v5 = vsub.f32 1.0, %v787_v4 }
  0x9c   : > { %v789_v6 = vmul.f32 %v2863_v3, %v788_v5 }
  0x9e   : > { %v790_v7 = vadd.f32 %v2863_v3, %v789_v6 }
  0xa0   : > { %v792_v8 = vsel %vm791_vm0, %v2863_v3, %v790_v7 }
 0x104   : > { %v783_v9 = vpop.xlane.xlu0 %782 }
 0x105   : > { %v793_v10 = vmul.f32 %v792_v8, %v783_v9 }
 0x107   : > { %v795_v11 = vsub.f32 %v778_v0, %v793_v10 }
 0x109   : > { %v797_v12 = vmul.f32 %v795_v11, %v795_v11 }
 0x10b   : > { %799 = vadd.xlane.f32.xlu1 %v797_v12 }
 0x10c   : > { %v785_v13 = vpop.xlane.xlu0 %784 }
 0x10d   : > { %v794_v14 = vmul.f32 %v792_v8, %v785_v13 }
 0x10f   : > { %v796_v15 = vsub.f32 %v779_v1, %v794_v14 }
 0x111   : > { %v798_v16 = vmul.f32 %v796_v15, %v796_v15 }
 0x113   : > { %801 = vadd.xlane.f32.xlu1 %v798_v16 }
 0x17e   : > { %v800_v17 = vpop.xlane.xlu1 %799 }
 0x17f   : > { %v803_v18 = vmul.f32 %v800_v17, %v792_v8 }
 0x181   : > { %v805_v19 = vadd.f32 1e-12, %v803_v18 }
 0x183   : > { %2864 = vrsqrt.f32 %v805_v19  ;;  %vm813_vm2 = vweird.f32 %v805_v19 }
 0x186   : > { %v802_v20 = vpop.xlane.xlu1 %801 }
 0x187   : > { %v804_v21 = vmul.f32 %v802_v20, %v792_v8 }
 0x189   : > { %v2865_v22 = vpop.eup %2864  ;;  %v806_v23 = vadd.f32 1e-12, %v804_v21 }
 0x18a   : > { %v808_v24 = vmul.f32 %v2865_v22, %v805_v19  ;;  %vm814_vm1 = vweird.f32 %v2865_v22 }
 0x18b   : > { %2866 = vrsqrt.f32 %v806_v23  ;;  %vm815_vm3 = vmor %vm813_vm2, %vm814_vm1  ;;  %vm823_vm5 = vweird.f32 %v806_v23 }
 0x18c   : > { %v809_v25 = vmul.f32 %v2865_v22, %v808_v24 }
 0x18e   : > { %v810_v26 = vmul.f32 0.5, %v809_v25 }
 0x190   : > { %v811_v27 = vsub.f32 1.5, %v810_v26 }
 0x191   : > { %v2867_v28 = vpop.eup %2866 }
 0x192   : > { %v812_v29 = vmul.f32 %v2865_v22, %v811_v27  ;;  %v818_v30 = vmul.f32 %v2867_v28, %v806_v23  ;;  %vm824_vm4 = vweird.f32 %v2867_v28 }
 0x193   : > { %vm825_vm6 = vmor %vm823_vm5, %vm824_vm4 }
 0x194   : > { %v816_v32 = vsel %vm815_vm3, %v2865_v22, %v812_v29  ;;  %v819_v33 = vmul.f32 %v2867_v28, %v818_v30 }
 0x195   : > { %v827_v35 = vmul.f32 %v816_v32, %v795_v11 }
 0x196   : > { %v820_v36 = vmul.f32 0.5, %v819_v33 }
 0x197   : > { %v832_v37 = vmul.f32 %v2860_v31, %v827_v35 }
 0x198   : > { %v821_v38 = vsub.f32 1.5, %v820_v36 }
 0x199   : > { %v837_v39 = vadd.f32 %v2861_v34, %v832_v37 }
 0x19a   : > { %v822_v40 = vmul.f32 %v2867_v28, %v821_v38 }
 0x19b   : > { %839 = vst [vmem:[#allocation10] sm:$0xff] %v837_v39 }
 0x19c   : > { %v826_v41 = vsel %vm825_vm6, %v2867_v28, %v822_v40 }
 0x19d   : > { %v828_v42 = vmul.f32 %v826_v41, %v796_v15 }
 0x19f   : > { %v833_v43 = vmul.f32 %v2860_v31, %v828_v42 }
 0x1a1   : > { %v838_v44 = vadd.f32 %v2861_v34, %v833_v43 }
 0x1a3   : > { %840 = vst [vmem:[#allocation10 + $0x8] sm:$0xff] %v838_v44 }
 0x1a4 PF: > { %v2525_v45 = vld [vmem:[%s3375_s18 + $0xa8] sm:$0xf]  ;;  %v2740_v46 = vld [vmem:[%s3375_s18 + $0xb0] sm:$0xf0]  ;;  %v2739_v47 = vld [vmem:[%s3375_s18 + $0xac] sm:$0xf]  ;;  %s3936_s3 = scalar_lea.vmem %s3887_s7, %s3399_s15  ;;  %s3937_s27 = scalar_lea.vmem %s3888_s8, %s3399_s15 }
 0x1a5   : > { %v2526_v48 = vor.u32 %v2740_v46, %v2525_v45  ;;  %v2527_v49 = vld [vmem:[%s3375_s18 + $0xb4] sm:$0xf0]  ;;  %v2513_v50 = vld [vmem:[%s3375_s18 + $0x90] sm:$0xf]  ;;  %v2737_v51 = vld [vmem:[%s3375_s18 + $0x98] sm:$0xf0]  ;;  %s3938_s14 = scalar_lea.vmem %s3889_s9, %s3399_s15 }
 0x1a6   : > { %v2530_v52 = vor.u32 %v2739_v47, %v2527_v49  ;;  %v2736_v53 = vld [vmem:[%s3375_s18 + $0x94] sm:$0xf]  ;;  %v2515_v54 = vld [vmem:[%s3375_s18 + $0x9c] sm:$0xf0]  ;;  %v2514_v55 = vor.u32 %v2737_v51, %v2513_v50  ;;  %v2501_v57 = vld [vmem:[%s3375_s18 + $0x78] sm:$0xf] }
 0x1a7   : > { %1013 = vmatpush.bf16.msra.mxu0 %v2526_v48  ;;  %v2518_v56 = vor.u32 %v2736_v53, %v2515_v54  ;;  %v2734_v58 = vld [vmem:[%s3375_s18 + $0x80] sm:$0xf0]  ;;  %v2733_v59 = vld [vmem:[%s3375_s18 + $0x7c] sm:$0xf]  ;;  %v2503_v60 = vld [vmem:[%s3375_s18 + $0x84] sm:$0xf0] }
 0x1a8   : > { %1027 = vmatpush.bf16.msra.mxu1 %v2530_v52  ;;  %v2502_v61 = vor.u32 %v2734_v58, %v2501_v57  ;;  %v2506_v62 = vor.u32 %v2733_v59, %v2503_v60  ;;  %v2489_v63 = vld [vmem:[%s3375_s18 + $0x60] sm:$0xf]  ;;  %v2731_v0 = vld [vmem:[%s3375_s18 + $0x68] sm:$0xf0]  ;;  %v2730_v1 = vld [vmem:[%s3375_s18 + $0x64] sm:$0xf] }
 0x1a9   : > { %v2491_v2 = vld [vmem:[%s3375_s18 + $0x6c] sm:$0xf0]  ;;  %v2490_v3 = vor.u32 %v2731_v0, %v2489_v63  ;;  %v2477_v4 = vld [vmem:[%s3375_s18 + $0x48] sm:$0xf]  ;;  %v2741_v6 = vld [vmem:[%s3375_s18 + $0xb8] sm:$0xf0] }
 0x1aa   : > { %v2533_v5 = vld [vmem:[%s3375_s18 + $0xb0] sm:$0xf]  ;;  %v2494_v7 = vor.u32 %v2730_v1, %v2491_v2  ;;  %v2728_v8 = vld [vmem:[%s3375_s18 + $0x50] sm:$0xf0]  ;;  %v2521_v10 = vld [vmem:[%s3375_s18 + $0x98] sm:$0xf] }
 0x1ab   : > { %1014 = vmatpush.bf16.msra.mxu0 %v2514_v55  ;;  %v2534_v9 = vor.u32 %v2741_v6, %v2533_v5  ;;  %v2738_v11 = vld [vmem:[%s3375_s18 + $0xa0] sm:$0xf0]  ;;  %v2727_v12 = vld [vmem:[%s3375_s18 + $0x4c] sm:$0xf]  ;;  %v2479_v13 = vld [vmem:[%s3375_s18 + $0x54] sm:$0xf0]  ;;  %v2478_v15 = vor.u32 %v2728_v8, %v2477_v4 }
 0x1ac   : > { %1028 = vmatpush.bf16.msra.mxu1 %v2518_v56  ;;  %v2522_v14 = vor.u32 %v2738_v11, %v2521_v10  ;;  %v2509_v16 = vld [vmem:[%s3375_s18 + $0x80] sm:$0xf]  ;;  %v2735_v17 = vld [vmem:[%s3375_s18 + $0x88] sm:$0xf0]  ;;  %v2482_v18 = vor.u32 %v2727_v12, %v2479_v13  ;;  %v2465_v19 = vld [vmem:[%s3375_s18 + $0x30] sm:$0xf] }
 0x1ad   : > { %1041 = vmatpush.bf16.msra.mxu2 %v2534_v9  ;;  %v2725_v20 = vld [vmem:[%s3375_s18 + $0x38] sm:$0xf0]  ;;  %v2724_v21 = vld [vmem:[%s3375_s18 + $0x34] sm:$0xf]  ;;  %v2467_v22 = vld [vmem:[%s3375_s18 + $0x3c] sm:$0xf0]  ;;  %v2510_v23 = vor.u32 %v2735_v17, %v2509_v16 }
 0x1ae   : > { %v2466_v24 = vor.u32 %v2725_v20, %v2465_v19  ;;  %v2497_v25 = vld [vmem:[%s3375_s18 + $0x68] sm:$0xf]  ;;  %v2732_v26 = vld [vmem:[%s3375_s18 + $0x70] sm:$0xf0]  ;;  %v2470_v27 = vor.u32 %v2724_v21, %v2467_v22  ;;  %v2453_v28 = vld [vmem:[%s3375_s18 + $0x18] sm:$0xf] }
 0x1af   : > { %1015 = vmatpush.bf16.msra.mxu0 %v2502_v61  ;;  %v2722_v29 = vld [vmem:[%s3375_s18 + $0x20] sm:$0xf0]  ;;  %v2721_v30 = vld [vmem:[%s3375_s18 + $0x1c] sm:$0xf]  ;;  %v2455_v31 = vld [vmem:[%s3375_s18 + $0x24] sm:$0xf0]  ;;  %v2498_v32 = vor.u32 %v2732_v26, %v2497_v25 }
 0x1b0   : > { %1029 = vmatpush.bf16.msra.mxu1 %v2506_v62  ;;  %v2454_v33 = vor.u32 %v2722_v29, %v2453_v28  ;;  %v2485_v34 = vld [vmem:[%s3375_s18 + $0x50] sm:$0xf]  ;;  %v2729_v35 = vld [vmem:[%s3375_s18 + $0x58] sm:$0xf0]  ;;  %v2458_v36 = vor.u32 %v2721_v30, %v2455_v31  ;;  %v2441_v37 = vld [vmem:[%s3375_s18] sm:$0xf] }
 0x1b1   : > { %1042 = vmatpush.bf16.msra.mxu2 %v2522_v14  ;;  %v2719_v38 = vld [vmem:[%s3375_s18 + $0x8] sm:$0xf0]  ;;  %v2718_v39 = vld [vmem:[%s3375_s18 + $0x4] sm:$0xf]  ;;  %v2443_v40 = vld [vmem:[%s3375_s18 + $0xc] sm:$0xf0]  ;;  %v2486_v42 = vor.u32 %v2729_v35, %v2485_v34 }
 0x1b2   : > { %v3496_v41 = vld [vmem:[#allocation10] sm:$0xff]  ;;  %v2442_v43 = vor.u32 %v2719_v38, %v2441_v37  ;;  %v3498_v44 = vld [vmem:[#allocation10 + $0x8] sm:$0xff]  ;;  %v2473_v45 = vld [vmem:[%s3375_s18 + $0x38] sm:$0xf]  ;;  %v2446_v47 = vor.u32 %v2718_v39, %v2443_v40  ;;  %vm1063_vm7 = vcmask 261120   ;;  %s3152_s21 = smov 32  }
 0x1b3   : > { %1016 = vmatpush.bf16.msra.mxu0 %v2490_v3  ;;  %v2726_v46 = vld [vmem:[%s3375_s18 + $0x40] sm:$0xf0]  ;;  %v844_v48 = vpack.c.bf16 %v3498_v44, %v3496_v41  ;;  %v2461_v50 = vld [vmem:[%s3375_s18 + $0x20] sm:$0xf]  ;;  %v2723_v51 = vld [vmem:[%s3375_s18 + $0x28] sm:$0xf0] }
 0x1b4   : > { %1030 = vmatpush.bf16.msra.mxu1 %v2494_v7  ;;  %v2474_v49 = vor.u32 %v2726_v46, %v2473_v45  ;;  %v2462_v52 = vor.u32 %v2723_v51, %v2461_v50  ;;  %v2449_v53 = vld [vmem:[%s3375_s18 + $0x8] sm:$0xf]  ;;  %v2720_v54 = vld [vmem:[%s3375_s18 + $0x10] sm:$0xf0]  ;;  %v3509_v56 = vld [vmem:[%s3421_s2] sm:$0x7] }
 0x1b5   : > { %1043 = vmatpush.bf16.msra.mxu2 %v2510_v23  ;;  %v2450_v55 = vor.u32 %v2720_v54, %v2449_v53  ;;  %v879_v57 = vperm.slane %v3509_v56, 0  ;;  %v880_v58 = vperm.slane %v3509_v56, 1  ;;  %s3150_s18 = smov 64   ;;  %s3151_s2 = smov 96   ;;  %vm1099_vm8 = vcmask 1043456  }
 0x1b6   : > { %s3935_s30 = sld [smem:[#allocation20_spill]]  ;;  %vm1083_vm9 = vcmask 64512   ;;  %vm1304_vm10 = vcmask 523264   ;;  %vm1306_vm11 = vcmask 785408   ;;  %p2812_p5 = scmp.eq.s32.totalorder %s3261_s25, 3 }
 0x1b7   : > { %1017 = vmatpush.bf16.msra.mxu0 %v2478_v15  ;;  %v881_v15 = vperm.slane %v3509_v56, 2  ;;  %s3946_s16 = sld [smem:[#allocation30_spill]]  ;;  %s3155_s15 = smov 128  }
 0x1b8   : > { %1031 = vmatpush.bf16.msra.mxu1 %v2482_v18 }
 0x1b9   : > { %1044 = vmatpush.bf16.msra.mxu2 %v2498_v32 }
 0x1bb   : > { %1018 = vmatpush.bf16.msra.mxu0 %v2466_v24 }
 0x1bc   : > { %1032 = vmatpush.bf16.msra.mxu1 %v2470_v27  ;;  %v843_v29 = vld [vmem:[%s3935_s30] sm:$0x3] }
 0x1bd   : > { %1045 = vmatpush.bf16.msra.mxu2 %v2486_v42  ;;  %v3546_v30 = vperm.slane %v843_v29, 0  ;;  %v3554_v46 = vperm.slane %v843_v29, 1 }
 0x1bf   : > { %1019 = vmatpush.bf16.msra.mxu0 %v2454_v33 }
 0x1c0   : > { %1033 = vmatpush.bf16.msra.mxu1 %v2458_v36 }
 0x1c1   : > { %1046 = vmatpush.bf16.msra.mxu2 %v2474_v49 }
 0x1c3   : > { %1020 = vmatpush.bf16.msra.mxu0 %v2442_v43 }
 0x1c4   : > { %1034 = vmatpush.bf16.msra.mxu1 %v2446_v47 }
 0x1c5   : > { %1047 = vmatpush.bf16.msra.mxu2 %v2462_v52 }
 0x1c6   : > { %1021 = vmatmul.bf16.vlgmr.msra.gmra.mxu0 %v844_v48 }
 0x1c7   : > { %1035 = vmatmul.bf16.vlgmr.msra.gmra.mxu1 %v844_v48 }
 0x1c9   : > { %1048 = vmatpush.bf16.msra.mxu2 %v2450_v55 }
 0x1cc   : > { %1049 = vmatmul.bf16.vlgmr.msra.gmra.mxu2 %v844_v48 }
 0x243   : > { %v1022_v59 = vpop.f32.mrf.mxu0 }
 0x244   : > { %v1036_v60 = vpop.f32.mrf.mxu1  ;;  %v1023_v61 = vadd.f32 %v1022_v59, %v879_v57 }
 0x245   : > { %v1037_v62 = vadd.f32 %v1036_v60, %v880_v58 }
 0x246   : > { %v1055_v0 = vmul.f32 0.17677669, %v1023_v61 }
 0x247   : > { %v1057_v63 = vpack.c.bf16 %v1037_v62, %v1037_v62 }
 0x248   : > { %v3514_v6 = vpack.c.bf16 %v1055_v0, %v1055_v0 }
 0x249   : > { %v1120_v1 = vunpack.c.l.b16 %v1057_v63  ;;  %v1068_v2 = vsel %vm1063_vm7, %v1057_v63, 0 }
 0x24a   : > { %1077 = vmatpush.bf16.xpose.msra.mxu3 %v1068_v2 }
 0x24b   : > { %v1121_v3 = vpack.c.b16 %v1120_v1, %v1120_v1  ;;  %v1024_v4 = vpop.f32.mrf.mxu0 }
 0x24c   : > { %v1038_v5 = vpop.f32.mrf.mxu1  ;;  %v1025_v8 = vadd.f32 %v1024_v4, %v879_v57 }
 0x24d   : > { %v1039_v7 = vadd.f32 %v1038_v5, %v880_v58  ;;  %1181 = vrot.lane.b32.xlu2 %v1121_v3, %s3150_s18  ;;  %1122 = vrot.lane.b32.xlu1 %v1121_v3, %s3151_s2 }
 0x24e   : > { %v1056_v11 = vmul.f32 0.17677669, %v1025_v8 }
 0x24f   : > { %v1058_v9 = vpack.c.bf16 %v1039_v7, %v1039_v7  ;;  %v1050_v16 = vpop.f32.mrf.mxu2 }
 0x250   : > { %v1308_v12 = vpack.c.bf16 %v1056_v11, %v1056_v11  ;;  %v1051_v17 = vadd.f32 %v1050_v16, %v881_v15 }
 0x251   : > { %2535 = vmatmul.msk.bf16.vlgmr.msra.gmra.mxu3 %vm1063_vm7, %v3514_v6  ;;  %v1314_v10 = vsel %vm1063_vm7, %v1058_v9, 0  ;;  %v1364_v13 = vunpack.c.l.b16 %v1058_v9 }
 0x252   : > { %1323 = vmatpush.bf16.xpose.msrb.mxu1 %v1314_v10  ;;  %v3535_v18 = vpack.c.bf16 %v1051_v17, %v1051_v17 }
 0x253   : > { %v1365_v14 = vpack.c.b16 %v1364_v13, %v1364_v13 }
 0x254   : > { %v1101_v19 = vsel %vm1099_vm8, %v3535_v18, 0 }
 0x255   : > { %1237 = vrot.lane.b32.xlu2 %v1121_v3, %s3152_s21  ;;  %1117 = vrot.lane.b32.xlu1 %v3514_v6, %s3151_s2 }
 0x256   : > { %1110 = vmatpush.bf16.msrb.mxu3 %v1101_v19 }
 0x257   : > { %v3570_v63 = vpop.f32.mrf.mxu2 }
 0x259   : > { %2543 = vmatmul.msk.bf16.vlgmr.msrb.gmra.mxu1 %vm1063_vm7, %v1308_v12 }
 0x25d   : > { %1366 = vrot.lane.b32.xlu2 %v1365_v14, %s3151_s2  ;;  %1235 = vrot.lane.b32.xlu1 %v3514_v6, %s3152_s21 }
 0x265   : > { %1425 = vrot.lane.b32.xlu2 %v1365_v14, %s3150_s18  ;;  %1361 = vrot.lane.b32.xlu1 %v1308_v12, %s3151_s2 }
 0x26d   : > { %1423 = vrot.lane.b32.xlu2 %v1308_v12, %s3150_s18  ;;  %1481 = vrot.lane.b32.xlu1 %v1365_v14, %s3152_s21 }
 0x2a7   : > { %v1182_v20 = vpop.permute.xlu2 %1181 }
 0x2a8   : > { %v1187_v21 = vsel %vm1063_vm7, %v1182_v20, 0  ;;  %v1156_v20 = vunpack.c.l.b16 %v3535_v18 }
 0x2a9   : > { %1196 = vmatpush.bf16.xpose.msrb.mxu2 %v1187_v21 }
 0x2af   : > { %v1238_v22 = vpop.permute.xlu2 %1237 }
 0x2b0   : > { %v1243_v54 = vsel %vm1063_vm7, %v1238_v22, 0  ;;  %v1157_v22 = vpack.c.b16 %v1156_v20, %v1156_v20 }
 0x2b7   : > { %v1367_v23 = vpop.permute.xlu2 %1366 }
 0x2b8   : > { %v1372_v58 = vsel %vm1063_vm7, %v1367_v23, 0 }
 0x2bf   : > { %v1426_v24 = vpop.permute.xlu2 %1425  ;;  %v1123_v25 = vpop.permute.xlu1 %1122 }
 0x2c0   : > { %v1431_v26 = vsel %vm1063_vm7, %v1426_v24, 0  ;;  %v1128_v27 = vsel %vm1063_vm7, %v1123_v25, 0 }
 0x2c1   : > { %1137 = vmatpush.bf16.xpose.msra.mxu3 %v1128_v27  ;;  %1440 = vmatpush.bf16.xpose.msra.mxu1 %v1431_v26 }
 0x2c7   : > { %v1424_v28 = vpop.permute.xlu2 %1423  ;;  %v1118_v53 = vpop.permute.xlu1 %1117 }
 0x2c8   : > { %2547 = vmatmul.msk.bf16.vlgmr.msra.gmra.mxu1 %vm1063_vm7, %v1424_v28 }
 0x2cf   : > { %v1236_v57 = vpop.permute.xlu1 %1235 }
 0x2d4   : > { %v1079_v31 = vpop.f32.mrf.mxu3 }
 0x2d5   : > { %v1080_v32 = vadd.f32 %v1079_v31, %v3546_v30 }
 0x2d6   : > { %v1325_v33 = vpop.f32.mrf.mxu1 }
 0x2d7   : > { %v1084_v34 = vsel %vm1083_vm9, %v1080_v32, -inf  ;;  %v1362_v59 = vpop.permute.xlu1 %1361  ;;  %v1326_v5 = vadd.f32 %v1325_v33, %v3554_v46 }
 0x2d8   : > { %1085 = vmax.xlane.f32.xlu0 %v1084_v34 }
 0x2d9   : > { %v1329_v10 = vsel %vm1083_vm9, %v1326_v5, -inf }
 0x2dc   : > { %v1081_v35 = vpop.f32.mrf.mxu3 }
 0x2de   : > { %v1327_v36 = vpop.f32.mrf.mxu1 }
 0x2df   : > { %v1482_v60 = vpop.permute.xlu1 %1481 }
 0x2e0   : > { %v1487_v61 = vsel %vm1063_vm7, %v1482_v60, 0 }
 0x345   : > { %v1442_v37 = vpop.f32.mrf.mxu1 }
 0x346   : > { %v3557_v47 = vadd.f32 %v1442_v37, %v3554_v46 }
 0x348   : > { %v1446_v48 = vsel %vm1083_vm9, %v3557_v47, -inf }
 0x34b   : > { %v1086_v38 = vpop.xlane.xlu0 %1085 }
 0x34c   : > { %v1087_v39 = vsub.f32 %v1080_v32, %v1086_v38 }
 0x34d   : > { %v1444_v40 = vpop.f32.mrf.mxu1 }
 0x34e   : > { %v1088_v42 = vmul.f32 1.442695, %v1087_v39 }
 0x350   : > { %2889 = vpow2.f32 %v1088_v42 }
 0x356   : > { %v2890_v43 = vpop.eup %2889 }
 0x357   : > { %v1090_v45 = vsel %vm1083_vm9, %v2890_v43, 0.0 }
 0x358   : > { %1091 = vadd.xlane.f32.xlu0 %v1090_v45 }
 0x36c   : > { %1179 = vrot.lane.b32.xlu0 %v3514_v6, %s3150_s18 }
 0x374   : > { %1479 = vrot.lane.b32.xlu0 %v1308_v12, %s3152_s21 }
 0x39e   : > { %1447 = vmax.xlane.f32.xlu0 %v1446_v48 }
 0x3cb   : > { %v1092_v49 = vpop.xlane.xlu0 %1091 }
 0x3cc   : > { %2891 = vrcp.f32 %v1092_v49 }
 0x3d2   : > { %v2892_v50 = vpop.eup %2891 }
 0x3d3   : > { %v1094_v51 = vmul.f32 %v2892_v50, %v2890_v43 }
 0x3d5   : > { %v1095_v52 = vpack.c.bf16 %v1094_v51, %v1094_v51 }
 0x3d7   : > { %2536 = vmatmul.msk.bf16.vlgmr.msrb.gmra.mxu3 %vm1083_vm9, %v1095_v52 }
 0x3d8   : > { %1252 = vmatpush.bf16.xpose.msrb.mxu3 %v1243_v54 }
 0x3de   : > { %v1180_v55 = vpop.permute.xlu0 %1179 }
 0x3df   : > { %2539 = vmatmul.msk.bf16.vlgmr.msrb.gmra.mxu2 %vm1063_vm7, %v1180_v55 }
 0x3e6   : > { %v1480_v62 = vpop.permute.xlu0 %1479 }
 0x3e7   : > { %2537 = vmatmul.msk.bf16.vlgmr.msra.gmra.mxu3 %vm1063_vm7, %v1118_v53  ;;  %v1053_v53 = vadd.f32 %v3570_v63, %v881_v15 }
 0x3e8   : > { %1381 = vmatpush.bf16.xpose.msra.mxu3 %v1372_v58 }
 0x3e9   : > { %v1060_v54 = vpack.c.bf16 %v1053_v53, %v1053_v53 }
 0x3eb   : > { %v1400_v55 = vunpack.c.l.b16 %v1060_v54 }
 0x3ed   : > { %v1401_v58 = vpack.c.b16 %v1400_v55, %v1400_v55 }
 0x3f7   : > { %2541 = vmatmul.msk.bf16.vlgmr.msrb.gmra.mxu3 %vm1063_vm7, %v1236_v57 }
 0x3f8   : > { %1496 = vmatpush.bf16.xpose.msrb.mxu3 %v1487_v61 }
 0x407   : > { %2545 = vmatmul.msk.bf16.vlgmr.msra.gmra.mxu3 %vm1063_vm7, %v1362_v59 }
 0x411   : > { %v1448_v36 = vpop.xlane.xlu0 %1447 }
 0x412   : > { %v1449_v56 = vsub.f32 %v3557_v47, %v1448_v36 }
 0x414   : > { %v1450_v15 = vmul.f32 1.442695, %v1449_v56  ;;  %v2749_v56 = vld [vmem:[%s3382_s6 + $0x38] sm:$0xff] }
 0x415   : > { %1619 = vmatpush.bf16.msrb.mxu1 %v2749_v56  ;;  %v2627_v56 = vld [vmem:[%s3388_s24 + $0x58] sm:$0xf0] }
 0x417   : > { %2549 = vmatmul.msk.bf16.vlgmr.msrb.gmra.mxu3 %vm1063_vm7, %v1480_v62 }
 0x45a   : > { %v3572_v0 = vpop.f32.mrf.mxu3 }
 0x462   : > { %v1114_v1 = vpop.f32.mrf.mxu3  ;;  %v1198_v2 = vpop.f32.mrf.mxu2 }
 0x463   : > { %v1199_v3 = vadd.f32 %v1198_v2, %v3546_v30 }
 0x465   : > { %v1202_v4 = vsel %vm1083_vm9, %v1199_v3, -inf }
 0x466   : > { %1203 = vmax.xlane.f32.xlu2 %v1202_v4 }
 0x46a   : > { %v1139_v6 = vpop.f32.mrf.mxu3  ;;  %v1200_v7 = vpop.f32.mrf.mxu2 }
 0x46b   : > { %v1140_v8 = vadd.f32 %v1139_v6, %v3546_v30 }
 0x46d   : > { %v1143_v9 = vsel %vm1083_vm9, %v1140_v8, -inf }
 0x46e   : > { %1144 = vmax.xlane.f32.xlu1 %v1143_v9  ;;  %1330 = vmax.xlane.f32.xlu2 %v1329_v10 }
 0x472   : > { %v1141_v11 = vpop.f32.mrf.mxu3 }
 0x47a   : > { %v1254_v12 = vpop.f32.mrf.mxu3 }
 0x47b   : > { %v1255_v13 = vadd.f32 %v1254_v12, %v3546_v30 }
 0x47d   : > { %v1258_v14 = vsel %vm1083_vm9, %v1255_v13, -inf }
 0x47e   : > { %1259 = vmax.xlane.f32.xlu0 %v1258_v14  ;;  %v1345_v14 = vsel %vm1099_vm8, %v1060_v54, 0 }
 0x482   : > { %v1256_v16 = vpop.f32.mrf.mxu3 }
 0x48a   : > { %v1383_v17 = vpop.f32.mrf.mxu3 }
 0x48b   : > { %v1384_v19 = vadd.f32 %v1383_v17, %v3554_v46 }
 0x48d   : > { %v1387_v21 = vsel %vm1083_vm9, %v1384_v19, -inf }
 0x48e   : > { %1388 = vmax.xlane.f32.xlu1 %v1387_v21 }
 0x492   : > { %v1385_v23 = vpop.f32.mrf.mxu3  ;;  %1158 = vrot.lane.b32.xlu0 %v1157_v22, %s3151_s2 }
 0x49a   : > { %v1498_v24 = vpop.f32.mrf.mxu3 }
 0x49b   : > { %v1499_v37 = vadd.f32 %v1498_v24, %v3554_v46 }
 0x49d   : > { %v1502_v42 = vsel %vm1083_vm9, %v1499_v37, -inf }
 0x4a2   : > { %v1500_v25 = vpop.f32.mrf.mxu3 }
 0x4a7   : > { %1270 = vrot.lane.b32.xlu1 %v1157_v22, %s3152_s21 }
 0x4d9   : > { %v1204_v26 = vpop.xlane.xlu2 %1203 }
 0x4da   : > { %v1205_v27 = vsub.f32 %v1199_v3, %v1204_v26 }
 0x4dc   : > { %v1206_v28 = vmul.f32 1.442695, %v1205_v27 }
 0x4de   : > { %2893 = vpow2.f32 %v1206_v28 }
 0x4e1   : > { %v1145_v29 = vpop.xlane.xlu1 %1144  ;;  %v1331_v30 = vpop.xlane.xlu2 %1330 }
 0x4e2   : > { %v1146_v31 = vsub.f32 %v1140_v8, %v1145_v29  ;;  %v1332_v32 = vsub.f32 %v1326_v5, %v1331_v30 }
 0x4e4   : > { %v2894_v18 = vpop.eup %2893  ;;  %v1147_v33 = vmul.f32 1.442695, %v1146_v31  ;;  %v1333_v34 = vmul.f32 1.442695, %v1332_v32 }
 0x4e5   : > { %v1208_v35 = vsel %vm1083_vm9, %v2894_v18, 0.0 }
 0x4e6   : > { %2895 = vpow2.f32 %v1147_v33  ;;  %1209 = vadd.xlane.f32.xlu2 %v1208_v35 }
 0x4e7   : > { %2897 = vpow2.f32 %v1333_v34 }
 0x4ec   : > { %v2896_v38 = vpop.eup %2895 }
 0x4ed   : > { %v3589_v39 = vpop.eup %2897  ;;  %v1149_v40 = vsel %vm1083_vm9, %v2896_v38, 0.0 }
 0x4ee   : > { %1150 = vadd.xlane.f32.xlu1 %v1149_v40  ;;  %v1335_v43 = vsel %vm1083_vm9, %v3589_v39, 0.0  ;;  %1503 = vmax.xlane.f32.xlu2 %v1502_v42 }
 0x4ef   : > { %1336 = vadd.xlane.f32.xlu0 %v1335_v43 }
 0x4f1   : > { %v1260_v45 = vpop.xlane.xlu0 %1259 }
 0x4f2   : > { %v1261_v48 = vsub.f32 %v1255_v13, %v1260_v45 }
 0x4f4   : > { %v1262_v49 = vmul.f32 1.442695, %v1261_v48 }
 0x4f6   : > { %2899 = vpow2.f32 %v1262_v49 }
 0x4fc   : > { %v2900_v50 = vpop.eup %2899 }
 0x4fd   : > { %v1264_v46 = vsel %vm1083_vm9, %v2900_v50, 0.0 }
 0x4fe   : > { %1265 = vadd.xlane.f32.xlu1 %v1264_v46 }
 0x501   : > { %v1389_v57 = vpop.xlane.xlu1 %1388 }
 0x502   : > { %v1390_v61 = vsub.f32 %v1384_v19, %v1389_v57 }
 0x504   : > { %v1159_v51 = vpop.permute.xlu0 %1158  ;;  %v1391_v62 = vmul.f32 1.442695, %v1390_v61 }
 0x505   : > { %v1164_v52 = vsel %vm1099_vm8, %v1159_v51, 0 }
 0x506   : > { %1214 = vrot.lane.b32.xlu2 %v1157_v22, %s3150_s18  ;;  %1173 = vmatpush.bf16.msrb.mxu0 %v1164_v52  ;;  %2901 = vpow2.f32 %v1391_v62 }
 0x507   : > { %2903 = vpow2.f32 %v1450_v15 }
 0x50c   : > { %v2902_v1 = vpop.eup %2901 }
 0x50d   : > { %v1393_v2 = vsel %vm1083_vm9, %v2902_v1, 0.0  ;;  %v3605_v63 = vpop.eup %2903 }
 0x50e   : > { %v1452_v3 = vsel %vm1083_vm9, %v3605_v63, 0.0 }
 0x517   : > { %1402 = vrot.lane.b32.xlu1 %v1401_v58, %s3151_s2 }
 0x519   : > { %v1271_v59 = vpop.permute.xlu1 %1270 }
 0x51a   : > { %v1276_v60 = vsel %vm1099_vm8, %v1271_v59, 0 }
 0x51b   : > { %1285 = vmatpush.bf16.msra.mxu0 %v1276_v60 }
 0x52f   : > { %1394 = vadd.xlane.f32.xlu2 %v1393_v2 }
 0x541   : > { %1453 = vadd.xlane.f32.xlu1 %v1452_v3  ;;  %v2748_v3 = vld [vmem:[%s3382_s6 + $0x30] sm:$0xff] }
 0x542   : > { %1620 = vmatpush.bf16.msrb.mxu1 %v2748_v3  ;;  %v2759_v3 = vld [vmem:[%s3388_s24 + $0x44] sm:$0xf0] }
 0x547   : > { %1514 = vrot.lane.b32.xlu2 %v1401_v58, %s3152_s21 }
 0x559   : > { %v1210_v4 = vpop.xlane.xlu2 %1209 }
 0x55a   : > { %2905 = vrcp.f32 %v1210_v4  ;;  %v2747_v4 = vld [vmem:[%s3382_s6 + $0x28] sm:$0xff] }
 0x55b   : > { %1621 = vmatpush.bf16.msrb.mxu1 %v2747_v4  ;;  %v2758_v4 = vld [vmem:[%s3388_s24 + $0x44] sm:$0xf] }
 0x560   : > { %v2906_v9 = vpop.eup %2905 }
 0x561   : > { %v1151_v5 = vpop.xlane.xlu1 %1150  ;;  %v1504_v6 = vpop.xlane.xlu2 %1503  ;;  %v1212_v10 = vmul.f32 %v2906_v9, %v2894_v18  ;;  %v2742_v9 = vld [vmem:[%s3382_s6] sm:$0xff] }
 0x562   : > { %2907 = vrcp.f32 %v1151_v5  ;;  %v1505_v7 = vsub.f32 %v1499_v37, %v1504_v6  ;;  %v1337_v20 = vpop.xlane.xlu0 %1336  ;;  %v2746_v5 = vld [vmem:[%s3382_s6 + $0x20] sm:$0xff]  ;;  %v2745_v6 = vld [vmem:[%s3382_s6 + $0x18] sm:$0xff] }
 0x563   : > { %v1213_v19 = vpack.c.bf16 %v1212_v10, %v1212_v10  ;;  %1622 = vmatpush.bf16.msrb.mxu1 %v2746_v5 }
 0x564   : > { %v1506_v8 = vmul.f32 1.442695, %v1505_v7  ;;  %v2744_v7 = vld [vmem:[%s3382_s6 + $0x10] sm:$0xff] }
 0x566   : > { %2909 = vpow2.f32 %v1506_v8  ;;  %v2743_v8 = vld [vmem:[%s3382_s6 + $0x8] sm:$0xff] }
 0x567   : > { %2911 = vrcp.f32 %v1337_v20  ;;  %1623 = vmatpush.bf16.msrb.mxu1 %v2745_v6  ;;  %v2619_v6 = vld [vmem:[%s3388_s24 + $0x48] sm:$0xf0] }
 0x568   : > { %v2908_v47 = vpop.eup %2907 }
 0x569   : > { %v1153_v11 = vmul.f32 %v2908_v47, %v2896_v38  ;;  %v1215_v12 = vpop.permute.xlu2 %1214 }
 0x56a   : > { %v1220_v13 = vsel %vm1099_vm8, %v1215_v12, 0 }
 0x56b   : > { %1229 = vmatpush.bf16.msra.mxu2 %v1220_v13  ;;  %v1154_v16 = vpack.c.bf16 %v1153_v11, %v1153_v11  ;;  %1624 = vmatpush.bf16.msrb.mxu1 %v2744_v7  ;;  %v2622_v7 = vor.u32 %v2758_v4, %v2619_v6 }
 0x56c   : > { %v2910_v17 = vpop.eup %2909 }
 0x56d   : > { %2538 = vmatmul.msk.bf16.vlgmr.msrb.gmra.mxu0 %vm1083_vm9, %v1154_v16  ;;  %v1508_v21 = vsel %vm1083_vm9, %v2910_v17, 0.0  ;;  %v2912_v23 = vpop.eup %2911 }
 0x56e   : > { %1509 = vadd.xlane.f32.xlu0 %v1508_v21  ;;  %2540 = vmatmul.msk.bf16.vlgmr.msra.gmra.mxu2 %vm1083_vm9, %v1213_v19  ;;  %v1339_v25 = vmul.f32 %v2912_v23, %v3589_v39 }
 0x56f   : > { %1354 = vmatpush.bf16.msrb.mxu2 %v1345_v14  ;;  %1625 = vmatpush.bf16.msrb.mxu1 %v2743_v8  ;;  %v2609_v8 = vld [vmem:[%s3388_s24 + $0x30] sm:$0xf] }
 0x570   : > { %v1340_v28 = vpack.c.bf16 %v1339_v25, %v1339_v25 }
 0x571   : > { %v1266_v22 = vpop.xlane.xlu1 %1265 }
 0x572   : > { %2913 = vrcp.f32 %v1266_v22 }
 0x573   : > { %1626 = vmatpush.bf16.msrb.mxu1 %v2742_v9  ;;  %v2757_v9 = vld [vmem:[%s3388_s24 + $0x34] sm:$0xf0] }
 0x578   : > { %v2914_v24 = vpop.eup %2913 }
 0x579   : > { %v1268_v26 = vmul.f32 %v2914_v24, %v2900_v50 }
 0x57b   : > { %v1269_v27 = vpack.c.bf16 %v1268_v26, %v1268_v26 }
 0x57d   : > { %2542 = vmatmul.msk.bf16.vlgmr.msra.gmra.mxu0 %vm1083_vm9, %v1269_v27  ;;  %v2883_v27 = vld [vmem:[%s3936_s3] ss:$0 sm:$0xff]  ;;  %s2222_s3 = sshll.u32 %s3946_s16, 4  ;;  %s2223_s3 = int_to_ptr.hbm [resolvable:$true] %s2222_s3 }
 0x57e   : > { %2544 = vmatmul.msk.bf16.vlgmr.msrb.gmra.mxu2 %vm1083_vm9, %v1340_v28 }
 0x582   : > { %1458 = vrot.lane.b32.xlu0 %v1401_v58, %s3150_s18 }
 0x589   : > { %v1403_v29 = vpop.permute.xlu1 %1402 }
 0x58a   : > { %v1408_v30 = vsel %vm1099_vm8, %v1403_v29, 0 }
 0x58b   : > { %1417 = vmatpush.bf16.msrb.mxu0 %v1408_v30 }
 0x5a2   : > { %v1395_v31 = vpop.xlane.xlu2 %1394 }
 0x5a3   : > { %2915 = vrcp.f32 %v1395_v31 }
 0x5a9   : > { %v2916_v32 = vpop.eup %2915 }
 0x5aa   : > { %v1397_v18 = vmul.f32 %v2916_v32, %v2902_v1  ;;  %v1515_v33 = vpop.permute.xlu2 %1514 }
 0x5ab   : > { %v1520_v34 = vsel %vm1099_vm8, %v1515_v33, 0 }
 0x5ac   : > { %v1398_v35 = vpack.c.bf16 %v1397_v18, %v1397_v18  ;;  %1529 = vmatpush.bf16.msra.mxu0 %v1520_v34  ;;  %v3153_v18 = vmov 128.0  }
 0x5ae   : > { %2546 = vmatmul.msk.bf16.vlgmr.msrb.gmra.mxu0 %vm1083_vm9, %v1398_v35 }
 0x5b4   : > { %v1454_v37 = vpop.xlane.xlu1 %1453 }
 0x5e1   : > { %v1510_v36 = vpop.xlane.xlu0 %1509 }
 0x5e2   : > { %2917 = vrcp.f32 %v1510_v36 }
 0x5e3   : > { %2919 = vrcp.f32 %v1454_v37 }
 0x5e4   : > { %2921 = vrcp.f32 %v3153_v18 }
 0x5e8   : > { %v2918_v38 = vpop.eup %2917 }
 0x5e9   : > { %v1512_v39 = vmul.f32 %v2918_v38, %v2910_v17  ;;  %v2920_v43 = vpop.eup %2919 }
 0x5ea   : > { %v1175_v40 = vpop.f32.mrf.mxu0  ;;  %v1456_v49 = vmul.f32 %v2920_v43, %v3605_v63  ;;  %v2922_v33 = vpop.eup %2921 }
 0x5eb   : > { %v1513_v42 = vpack.c.bf16 %v1512_v39, %v1512_v39  ;;  %v1642_v34 = vmul.f32 128.0, %v2922_v33  ;;  %vm1646_vm12 = vweird.f32 %v2922_v33 }
 0x5ec   : > { %v1457_v51 = vpack.c.bf16 %v1456_v49, %v1456_v49  ;;  %v2641_v49 = vld [vmem:[%s3388_s24 + $0x70] sm:$0xf] }
 0x5ed   : > { %2550 = vmatmul.msk.bf16.vlgmr.msra.gmra.mxu0 %vm1083_vm9, %v1513_v42  ;;  %v1643_v35 = vsub.f32 1.0, %v1642_v34 }
 0x5ef   : > { %v1644_v36 = vmul.f32 %v2922_v33, %v1643_v35 }
 0x5f1   : > { %v1231_v45 = vpop.f32.mrf.mxu2  ;;  %v1645_v37 = vadd.f32 %v2922_v33, %v1644_v36 }
 0x5f2   : > { %v1177_v48 = vpop.f32.mrf.mxu0 }
 0x5f3   : > { %v3647_v38 = vsel %vm1646_vm12, %v2922_v33, %v1645_v37 }
 0x5f4   : > { %v1459_v50 = vpop.permute.xlu0 %1458 }
 0x5f5   : > { %v1464_v46 = vsel %vm1099_vm8, %v1459_v50, 0  ;;  %v2765_v50 = vld [vmem:[%s3388_s24 + $0x74] sm:$0xf0] }
 0x5f6   : > { %1473 = vmatpush.bf16.msra.mxu2 %v1464_v46  ;;  %v2764_v46 = vld [vmem:[%s3388_s24 + $0x74] sm:$0xf] }
 0x5f9   : > { %v1233_v52 = vpop.f32.mrf.mxu2  ;;  %2548 = vmatmul.msk.bf16.vlgmr.msra.gmra.mxu2 %vm1083_vm9, %v1457_v51  ;;  %v2642_v51 = vor.u32 %v2765_v50, %v2641_v49 }
 0x5fa   : > { %v1287_v53 = vpop.f32.mrf.mxu0  ;;  %v2643_v52 = vld [vmem:[%s3388_s24 + $0x78] sm:$0xf0] }
 0x5fb   : > { %1798 = vmatpush.bf16.msrb.mxu2 %v2642_v51 }
 0x601   : > { %v1356_v54 = vpop.f32.mrf.mxu2 }
 0x602   : > { %v1289_v55 = vpop.f32.mrf.mxu0 }
 0x603   : > { %v2763_v55 = vld [vmem:[%s3388_s24 + $0x64] sm:$0xf0] }
 0x609   : > { %v1358_v57 = vpop.f32.mrf.mxu2 }
 0x60a   : > { %v2762_v57 = vld [vmem:[%s3388_s24 + $0x64] sm:$0xf] }
 0x62b   : > { %v1419_v58 = vpop.f32.mrf.mxu0 }
 0x62c   : > { %v2868_v59 = vpack.i.bf16 %v1419_v58, %v1175_v40 }
 0x62e   : > { %2869 = vrot.lane.b32.xlu1 %v2868_v59, %s3152_s21  ;;  %v2635_v59 = vld [vmem:[%s3388_s24 + $0x68] sm:$0xf0] }
 0x633   : > { %v1421_v60 = vpop.f32.mrf.mxu0 }
 0x634   : > { %v2638_v60 = vor.u32 %v2762_v57, %v2635_v59 }
 0x66a   : > { %v1531_v61 = vpop.f32.mrf.mxu0 }
 0x66b   : > { %v2878_v63 = vpack.i.bf16 %v1531_v61, %v1287_v53  ;;  %v2646_v53 = vor.u32 %v2764_v46, %v2643_v52  ;;  %v2625_v61 = vld [vmem:[%s3388_s24 + $0x50] sm:$0xf] }
 0x66d   : > { %1812 = vmatpush.bf16.msra.mxu3 %v2646_v53 }
 0x671   : > { %1813 = vmatpush.bf16.msra.mxu3 %v2638_v60 }
 0x672   : > { %v1533_v62 = vpop.f32.mrf.mxu0 }
 0x673   : > { %v2761_v62 = vld [vmem:[%s3388_s24 + $0x54] sm:$0xf0] }
 0x67c   : > { %v1475_v1 = vpop.f32.mrf.mxu2 }
 0x67d   : > { %v2873_v2 = vpack.i.bf16 %v1475_v1, %v1231_v45  ;;  %v2760_v1 = vld [vmem:[%s3388_s24 + $0x54] sm:$0xf] }
 0x67f   : > { %2874 = vrot.lane.b32.xlu0 %v2873_v2, %s3150_s18  ;;  %v2626_v2 = vor.u32 %v2761_v62, %v2625_v61  ;;  %v2885_v61 = vld [vmem:[%s3938_s14] ss:$0 sm:$0xff] }
 0x684   : > { %v1477_v15 = vpop.f32.mrf.mxu2 }
 0x685   : > { %v2630_v15 = vor.u32 %v2760_v1, %v2627_v56  ;;  %v1712_v56 = vld [vmem:[%s3427_s10] sm:$0x3]  ;;  %s1990_s10 = scalar_select %p772_p10, 1, 0 }
 0x687   : > { %2879 = vrot.lane.b32.xlu0 %v2878_v63, %s3151_s2  ;;  %1814 = vmatpush.bf16.msra.mxu3 %v2630_v15  ;;  %v2617_v63 = vld [vmem:[%s3388_s24 + $0x40] sm:$0xf]  ;;  %v1714_v15 = vperm.slane %v1712_v56, 0 }
 0x688   : > { %v2618_v5 = vor.u32 %v2759_v3, %v2617_v63  ;;  %v1715_v63 = vperm.slane %v1712_v56, 1 }
 0x68b   : > { %1815 = vmatpush.bf16.msra.mxu3 %v2622_v7 }
 0x6a0   : > { %v2870_v10 = vpop.permute.xlu1 %2869 }
 0x6a1   : > { %v2872_v11 = vunpack.i.h.bf16 %v2870_v10  ;;  %v2871_v12 = vunpack.i.l.bf16 %v2870_v10  ;;  %v2610_v10 = vor.u32 %v2757_v9, %v2609_v8 }
 0x6a3   : > { %v1303_v17 = vsel %vm1063_vm7, %v3572_v0, %v2871_v12  ;;  %v1547_v19 = vsel %vm1063_vm7, %v1356_v54, %v2872_v11  ;;  %v2633_v54 = vld [vmem:[%s3388_s24 + $0x60] sm:$0xf]  ;;  %v2611_v11 = vld [vmem:[%s3388_s24 + $0x38] sm:$0xf0] }
 0x6a4   : > { %v2634_v58 = vor.u32 %v2763_v55, %v2633_v54  ;;  %v2884_v55 = vld [vmem:[%s3937_s27] ss:$0 sm:$0xff] }
 0x6a6   : > { %1799 = vmatpush.bf16.msrb.mxu2 %v2634_v58 }
 0x6aa   : > { %1800 = vmatpush.bf16.msrb.mxu2 %v2626_v2 }
 0x6ae   : > { %1801 = vmatpush.bf16.msrb.mxu2 %v2618_v5 }
 0x6b2   : > { %1802 = vmatpush.bf16.msrb.mxu2 %v2610_v10 }
 0x6f1   : > { %v2875_v47 = vpop.permute.xlu0 %2874 }
 0x6f2   : > { %v2877_v13 = vunpack.i.h.bf16 %v2875_v47  ;;  %v2876_v14 = vunpack.i.l.bf16 %v2875_v47  ;;  %v2756_v47 = vld [vmem:[%s3388_s24 + $0x34] sm:$0xf] }
 0x6f3   : > { %v2614_v12 = vor.u32 %v2756_v47, %v2611_v11 }
 0x6f4   : > { %v1548_v22 = vsel %vm1304_vm10, %v1547_v19, %v2877_v13  ;;  %v1305_v23 = vsel %vm1304_vm10, %v1303_v17, %v2876_v14  ;;  %v2601_v13 = vld [vmem:[%s3388_s24 + $0x20] sm:$0xf]  ;;  %v2755_v14 = vld [vmem:[%s3388_s24 + $0x24] sm:$0xf0]  ;;  %v2603_v19 = vld [vmem:[%s3388_s24 + $0x28] sm:$0xf0] }
 0x6f5   : > { %1816 = vmatpush.bf16.msra.mxu3 %v2614_v12  ;;  %v2602_v17 = vor.u32 %v2755_v14, %v2601_v13 }
 0x6f7   : > { %1803 = vmatpush.bf16.msrb.mxu2 %v2602_v17  ;;  %v2773_v17 = vld [vmem:[%s3390_s19 + $0x38] sm:$0xff] }
 0x6f8   : > { %2131 = vmatpush.bf16.msrb.mxu0 %v2773_v17 }
 0x6f9   : > { %v2880_v16 = vpop.permute.xlu0 %2879 }
 0x6fa   : > { %v2882_v20 = vunpack.i.h.bf16 %v2880_v16  ;;  %v2881_v21 = vunpack.i.l.bf16 %v2880_v16  ;;  %v2754_v16 = vld [vmem:[%s3388_s24 + $0x24] sm:$0xf] }
 0x6fc   : > { %v1307_v24 = vsel %vm1306_vm11, %v1305_v23, %v2881_v21  ;;  %v1549_v25 = vsel %vm1306_vm11, %v1548_v22, %v2882_v20  ;;  %v2606_v20 = vor.u32 %v2754_v16, %v2603_v19  ;;  %v2593_v21 = vld [vmem:[%s3388_s24 + $0x10] sm:$0xf]  ;;  %v2753_v22 = vld [vmem:[%s3388_s24 + $0x14] sm:$0xf0]  ;;  %v2752_v23 = vld [vmem:[%s3388_s24 + $0x14] sm:$0xf] }
 0x6fd   : > { %v1550_v26 = vpack.c.bf16 %v1549_v25, %v1307_v24  ;;  %v2594_v24 = vor.u32 %v2753_v22, %v2593_v21  ;;  %v2595_v25 = vld [vmem:[%s3388_s24 + $0x18] sm:$0xf0]  ;;  %v2772_v22 = vld [vmem:[%s3390_s19 + $0x30] sm:$0xff] }
 0x6fe   : > { %1817 = vmatpush.bf16.msra.mxu3 %v2606_v20  ;;  %v2781_v19 = vld [vmem:[%s3390_s19 + $0x78] sm:$0xff]  ;;  %2132 = vmatpush.bf16.msrb.mxu0 %v2772_v22 }
 0x6ff   : > { %1627 = vmatmul.bf16.vlgmr.msrb.gmra.mxu1 %v1550_v26  ;;  %v2585_v26 = vld [vmem:[%s3388_s24] sm:$0xf]  ;;  %1804 = vmatpush.bf16.msrb.mxu2 %v2594_v24 }
 0x700   : > { %2145 = vmatpush.bf16.msra.mxu1 %v2781_v19 }
 0x77c   : > { %v1628_v28 = vpop.f32.mrf.mxu1 }
 0x77d   : > { %v1629_v29 = vadd.f32 %v2883_v27, %v1628_v28  ;;  %v3690_v28 = vstv %s3403_s1 }
 0x77f   : > { %v1633_v30 = vadd.f32 %v1629_v29, %v3496_v41 }
 0x781   : > { %1637 = vadd.xlane.f32.xlu2 %v1633_v30 }
 0x784   : > { %v1630_v0 = vpop.f32.mrf.mxu1 }
 0x785   : > { %v1631_v31 = vadd.f32 %v2883_v27, %v1630_v0  ;;  %v2751_v27 = vld [vmem:[%s3388_s24 + $0x4] sm:$0xf0]  ;;  %v2750_v0 = vld [vmem:[%s3388_s24 + $0x4] sm:$0xf] }
 0x786   : > { %v2586_v18 = vor.u32 %v2751_v27, %v2585_v26 }
 0x787   : > { %v1634_v32 = vadd.f32 %v1631_v31, %v3498_v44  ;;  %v2587_v31 = vld [vmem:[%s3388_s24 + $0x8] sm:$0xf0] }
 0x788   : > { %v2590_v33 = vor.u32 %v2750_v0, %v2587_v31  ;;  %1805 = vmatpush.bf16.msrb.mxu2 %v2586_v18  ;;  %v2779_v18 = vld [vmem:[%s3390_s19 + $0x68] sm:$0xff] }
 0x789   : > { %1639 = vadd.xlane.f32.xlu0 %v1634_v32 }
 0x7f4   : > { %v1638_v41 = vpop.xlane.xlu2 %1637 }
 0x7f5   : > { %v1648_v39 = vmul.f32 %v3647_v38, %v1638_v41 }
 0x7f7   : > { %v3650_v40 = vsub.f32 %v1633_v30, %v1648_v39  ;;  %v2598_v30 = vor.u32 %v2752_v23, %v2595_v25  ;;  %v2780_v23 = vld [vmem:[%s3390_s19 + $0x70] sm:$0xff] }
 0x7f8   : > { %2146 = vmatpush.bf16.msra.mxu1 %v2780_v23 }
 0x7f9   : > { %v1652_v44 = vmul.f32 %v3650_v40, %v3650_v40  ;;  %1818 = vmatpush.bf16.msra.mxu3 %v2598_v30 }
 0x7fb   : > { %1654 = vadd.xlane.f32.xlu1 %v1652_v44 }
 0x7fc   : > { %v1640_v42 = vpop.xlane.xlu0 %1639  ;;  %2147 = vmatpush.bf16.msra.mxu1 %v2779_v18 }
 0x7fd   : > { %v1649_v43 = vmul.f32 %v3647_v38, %v1640_v42  ;;  %1819 = vmatpush.bf16.msra.mxu3 %v2590_v33 }
 0x7ff   : > { %v3655_v45 = vsub.f32 %v1634_v32, %v1649_v43 }
 0x801   : > { %v1653_v48 = vmul.f32 %v3655_v45, %v3655_v45 }
 0x803   : > { %1656 = vadd.xlane.f32.xlu2 %v1653_v48 }
 0x86e   : > { %v1655_v29 = vpop.xlane.xlu1 %1654 }
 0x86f   : > { %v1658_v32 = vmul.f32 %v1655_v29, %v3647_v38 }
 0x871   : > { %v1661_v34 = vadd.f32 %v3690_v28, %v1658_v32  ;;  %v2771_v32 = vld [vmem:[%s3390_s19 + $0x28] sm:$0xff] }
 0x872   : > { %2133 = vmatpush.bf16.msrb.mxu0 %v2771_v32 }
 0x873   : > { %2923 = vrsqrt.f32 %v1661_v34  ;;  %vm1669_vm14 = vweird.f32 %v1661_v34 }
 0x876   : > { %v1657_v35 = vpop.xlane.xlu2 %1656 }
 0x877   : > { %v1659_v36 = vmul.f32 %v1657_v35, %v3647_v38 }
 0x879   : > { %v2924_v37 = vpop.eup %2923  ;;  %v1662_v41 = vadd.f32 %v3690_v28, %v1659_v36 }
 0x87a   : > { %v1664_v39 = vmul.f32 %v2924_v37, %v1661_v34  ;;  %vm1670_vm13 = vweird.f32 %v2924_v37 }
 0x87b   : > { %2925 = vrsqrt.f32 %v1662_v41  ;;  %vm1671_vm15 = vmor %vm1669_vm14, %vm1670_vm13  ;;  %vm1679_vm1 = vweird.f32 %v1662_v41 }
 0x87c   : > { %v1665_v44 = vmul.f32 %v2924_v37, %v1664_v39 }
 0x87e   : > { %v1666_v42 = vmul.f32 0.5, %v1665_v44 }
 0x880   : > { %v1667_v43 = vsub.f32 1.5, %v1666_v42 }
 0x881   : > { %v2926_v48 = vpop.eup %2925 }
 0x882   : > { %v1668_v49 = vmul.f32 %v2924_v37, %v1667_v43  ;;  %v1674_v50 = vmul.f32 %v2926_v48, %v1662_v41  ;;  %vm1680_vm0 = vweird.f32 %v2926_v48 }
 0x883   : > { %vm1681_vm2 = vmor %vm1679_vm1, %vm1680_vm0 }
 0x884   : > { %v1675_v46 = vmul.f32 %v2926_v48, %v1674_v50  ;;  %v1672_v51 = vsel %vm1671_vm15, %v2924_v37, %v1668_v49  ;;  %v2770_v49 = vld [vmem:[%s3390_s19 + $0x20] sm:$0xff] }
 0x885   : > { %v1683_v54 = vmul.f32 %v1672_v51, %v3650_v40  ;;  %v2778_v50 = vld [vmem:[%s3390_s19 + $0x60] sm:$0xff]  ;;  %2134 = vmatpush.bf16.msrb.mxu0 %v2770_v49 }
 0x886   : > { %v1676_v52 = vmul.f32 0.5, %v1675_v46  ;;  %2148 = vmatpush.bf16.msra.mxu1 %v2778_v50 }
 0x887   : > { %v1688_v60 = vmul.f32 %v2884_v55, %v1683_v54 }
 0x888   : > { %v1677_v53 = vsub.f32 1.5, %v1676_v52 }
 0x889   : > { %v3710_v1 = vadd.f32 %v2885_v61, %v1688_v60  ;;  %v2769_v60 = vld [vmem:[%s3390_s19 + $0x18] sm:$0xff] }
 0x88a   : > { %v1678_v57 = vmul.f32 %v2926_v48, %v1677_v53  ;;  %2135 = vmatpush.bf16.msrb.mxu0 %v2769_v60 }
 0x88c   : > { %v1682_v58 = vsel %vm1681_vm2, %v2926_v48, %v1678_v57 }
 0x88d   : > { %v1684_v59 = vmul.f32 %v1682_v58, %v3655_v45 }
 0x88f   : > { %v1689_v62 = vmul.f32 %v2884_v55, %v1684_v59 }
 0x891   : > { %v3712_v40 = vadd.f32 %v2885_v61, %v1689_v62  ;;  %v2777_v61 = vld [vmem:[%s3390_s19 + $0x58] sm:$0xff] }
 0x892   : > { %2149 = vmatpush.bf16.msra.mxu1 %v2777_v61 }
 0x893   : > { %v1695_v2 = vpack.c.bf16 %v3712_v40, %v3710_v1 }
 0x895   : > { %1806 = vmatmul.bf16.vlgmr.msrb.gmra.mxu2 %v1695_v2  ;;  %1820 = vmatmul.bf16.vlgmr.msra.gmra.mxu3 %v1695_v2 }
 0x918   : > { %v1807_v45 = vpop.f32.mrf.mxu2  ;;  %v1821_v3 = vpop.f32.mrf.mxu3 }
 0x919   : > { %v3717_v4 = vadd.f32 %v1807_v45, %v1714_v15  ;;  %v3719_v5 = vadd.f32 %v1821_v3, %v1715_v63 }
 0x91b   : > { %v3722_v6 = vmul.f32 0.70710677, %v3717_v4  ;;  %v3725_v7 = vmul.f32 0.70710677, %v3719_v5 }
 0x91d   : > { %v3728_v8 = vand.u32 2147483647, %v3722_v6  ;;  %v3731_v9 = vand.u32 2147483647, %v3725_v7 }
 0x91f   : > { %v1838_v47 = vmul.f32 0.3275911, %v3728_v8  ;;  %v1839_v10 = vmul.f32 0.3275911, %v3731_v9  ;;  %v1942_v51 = vsub.f32 0.0, %v3728_v8  ;;  %v1943_v54 = vsub.f32 0.0, %v3731_v9 }
 0x920   : > { %v1809_v11 = vpop.f32.mrf.mxu2  ;;  %v1823_v13 = vpop.f32.mrf.mxu3 }
 0x921   : > { %v1842_v12 = vadd.f32 1.0, %v1838_v47  ;;  %v1843_v14 = vadd.f32 1.0, %v1839_v10  ;;  %v3735_v16 = vadd.f32 %v1809_v11, %v1714_v15  ;;  %v3739_v20 = vadd.f32 %v1823_v13, %v1715_v63  ;;  %v2768_v13 = vld [vmem:[%s3390_s19 + $0x10] sm:$0xff] }
 0x922   : > { %v1946_v3 = vmul.f32 %v1942_v51, %v3728_v8  ;;  %v1947_v47 = vmul.f32 %v1943_v54, %v3731_v9  ;;  %2136 = vmatpush.bf16.msrb.mxu0 %v2768_v13  ;;  %v2774_v51 = vld [vmem:[%s3390_s19 + $0x40] sm:$0xff] }
 0x923   : > { %2927 = vrcp.f32 %v1842_v12  ;;  %v3742_v21 = vmul.f32 0.70710677, %v3735_v16  ;;  %v3750_v25 = vmul.f32 0.70710677, %v3739_v20  ;;  %v1855_v35 = vand.u32 2147483647, %v1842_v12 }
 0x924   : > { %2929 = vrcp.f32 %v1843_v14  ;;  %v1857_v36 = vand.u32 2147483648, %v1842_v12  ;;  %v1872_v44 = vand.u32 2147483648, %v1843_v14  ;;  %v1870_v43 = vand.u32 2147483647, %v1843_v14 }
 0x925   : > { %v3747_v24 = vand.u32 2147483647, %v3742_v21  ;;  %v3754_v31 = vand.u32 2147483647, %v3750_v25  ;;  %vm1851_vm5 = vweird.f32 %v1842_v12  ;;  %vm1866_vm7 = vweird.f32 %v1843_v14 }
 0x926   : > { %v1858_v52 = vor.u32 1.1754944e-38, %v1857_v36  ;;  %vm1856_vm8 = vcmp.eq.f32.partialorder %v1855_v35, 8.507059e+37  ;;  %v1873_v57 = vor.u32 1.1754944e-38, %v1872_v44  ;;  %vm1871_vm10 = vcmp.eq.f32.partialorder %v1870_v43, 8.507059e+37  ;;  %v2775_v35 = vld [vmem:[%s3390_s19 + $0x48] sm:$0xff] }
 0x927   : > { %v1840_v30 = vmul.f32 0.3275911, %v3747_v24  ;;  %v1841_v41 = vmul.f32 0.3275911, %v3754_v31  ;;  %v1944_v50 = vsub.f32 0.0, %v3747_v24 }
 0x929   : > { %v2928_v26 = vpop.eup %2927  ;;  %v3758_v34 = vadd.f32 1.0, %v1840_v30  ;;  %v3762_v48 = vadd.f32 1.0, %v1841_v41 }
 0x92a   : > { %v2930_v27 = vpop.eup %2929  ;;  %v1847_v29 = vmul.f32 %v2928_v26, %v1842_v12  ;;  %vm1852_vm3 = vweird.f32 %v2928_v26 }
 0x92b   : > { %v1862_v0 = vmul.f32 %v2930_v27, %v1843_v14  ;;  %2931 = vrcp.f32 %v3758_v34  ;;  %vm1867_vm4 = vweird.f32 %v2930_v27  ;;  %vm1853_vm6 = vmor %vm1851_vm5, %vm1852_vm3  ;;  %v1885_v10 = vand.u32 2147483647, %v3758_v34  ;;  %v2776_v14 = vld [vmem:[%s3390_s19 + $0x50] sm:$0xff] }
 0x92c   : > { %v1848_v33 = vsub.f32 1.0, %v1847_v29  ;;  %vm1868_vm9 = vmor %vm1866_vm7, %vm1867_vm4  ;;  %2933 = vrcp.f32 %v3762_v48  ;;  %v1887_v22 = vand.u32 2147483648, %v3758_v34  ;;  %2150 = vmatpush.bf16.msra.mxu1 %v2776_v14  ;;  %v1952_v29 = vmul.f32 1.442695, %v1947_v47 }
 0x92d   : > { %v1863_v37 = vsub.f32 1.0, %v1862_v0  ;;  %vm1881_vm12 = vweird.f32 %v3758_v34  ;;  %vm3789_vm13 = vcmp.eq.f32.partialorder %v1885_v10, 8.507059e+37  ;;  %v1900_v41 = vand.u32 2147483647, %v3762_v48 }
 0x92e   : > { %v1849_v39 = vmul.f32 %v2928_v26, %v1848_v33  ;;  %v2767_v33 = vld [vmem:[%s3390_s19 + $0x8] sm:$0xff]  ;;  %vm1896_vm0 = vweird.f32 %v3762_v48  ;;  %vm1966_vm3 = vcmp.lt.f32.partialorder %v3722_v6, 0.0  ;;  %vm1967_vm4 = vcmp.lt.f32.partialorder %v3725_v7, 0.0 }
 0x92f   : > { %v1864_v42 = vmul.f32 %v2930_v27, %v1863_v37  ;;  %v1888_v37 = vor.u32 1.1754944e-38, %v1887_v22  ;;  %2137 = vmatpush.bf16.msrb.mxu0 %v2767_v33  ;;  %vm1901_vm2 = vcmp.eq.f32.partialorder %v1900_v41, 8.507059e+37  ;;  %vm1968_vm5 = vcmp.lt.f32.partialorder %v3742_v21, 0.0 }
 0x930   : > { %v1850_v46 = vadd.f32 %v2928_v26, %v1849_v39  ;;  %2151 = vmatpush.bf16.msra.mxu1 %v2775_v35  ;;  %v1991_v6 = vstv %s1990_s10  ;;  %v1988_v21 = vmax.f32 %v3735_v16, 0.0  ;;  %vm1969_vm7 = vcmp.lt.f32.partialorder %v3750_v25, 0.0 }
 0x931   : > { %v1865_v53 = vadd.f32 %v2930_v27, %v1864_v42  ;;  %v2932_v62 = vpop.eup %2931 }
 0x932   : > { %v1854_v55 = vsel %vm1853_vm6, %v2928_v26, %v1850_v46  ;;  %v1877_v63 = vmul.f32 %v2932_v62, %v3758_v34  ;;  %v2934_v17 = vpop.eup %2933  ;;  %vm1882_vm11 = vweird.f32 %v2932_v62  ;;  %v1902_v34 = vand.u32 2147483648, %v3762_v48  ;;  %v2766_v46 = vld [vmem:[%s3390_s19] sm:$0xff] }
 0x933   : > { %v3770_v58 = vsel %vm1856_vm8, %v1858_v52, %v1854_v55  ;;  %v1869_v59 = vsel %vm1868_vm9, %v2930_v27, %v1865_v53  ;;  %v1892_v8 = vmul.f32 %v2934_v17, %v3762_v48  ;;  %v1950_v27 = vmul.f32 1.442695, %v1946_v3  ;;  %vm1883_vm14 = vmor %vm1881_vm12, %vm1882_vm11  ;;  %2138 = vmatpush.bf16.msrb.mxu0 %v2766_v46 }
 0x934   : > { %v1906_v2 = vmul.f32 1.0614054, %v3770_v58  ;;  %v3775_v56 = vsel %vm1871_vm10, %v1873_v57, %v1869_v59  ;;  %v1878_v12 = vsub.f32 1.0, %v1877_v63  ;;  %vm1897_vm15 = vweird.f32 %v2934_v17  ;;  %2152 = vmatpush.bf16.msra.mxu1 %v2774_v51 }
 0x935   : > { %v1907_v15 = vmul.f32 1.0614054, %v3775_v56  ;;  %v1893_v18 = vsub.f32 1.0, %v1892_v8  ;;  %2935 = vpow2.f32 %v1950_v27  ;;  %vm1898_vm1 = vmor %vm1896_vm0, %vm1897_vm15  ;;  %v1903_v57 = vor.u32 1.1754944e-38, %v1902_v34 }
 0x936   : > { %v1910_v45 = vadd.f32 -1.4531521, %v1906_v2  ;;  %v1879_v26 = vmul.f32 %v2932_v62, %v1878_v12  ;;  %2937 = vpow2.f32 %v1952_v29  ;;  %v1948_v2 = vmul.f32 %v1944_v50, %v3747_v24 }
 0x937   : > { %v1911_v11 = vadd.f32 -1.4531521, %v1907_v15  ;;  %v1894_v42 = vmul.f32 %v2934_v17, %v1893_v18  ;;  %v1945_v63 = vsub.f32 0.0, %v3754_v31  ;;  %vm3822_vm6 = vcmp.eq.s32.totalorder %v1991_v6, 1 }
 0x938   : > { %v1914_v19 = vmul.f32 %v1910_v45, %v3770_v58  ;;  %v1880_v0 = vadd.f32 %v2932_v62, %v1879_v26 }
 0x939   : > { %v1915_v23 = vmul.f32 %v1911_v11, %v3775_v56  ;;  %v1895_v54 = vadd.f32 %v2934_v17, %v1894_v42  ;;  %v1949_v22 = vmul.f32 %v1945_v63, %v3754_v31 }
 0x93a   : > { %v1918_v9 = vadd.f32 1.4214138, %v1914_v19  ;;  %v1884_v44 = vsel %vm1883_vm14, %v2932_v62, %v1880_v0  ;;  %v1954_v19 = vmul.f32 1.442695, %v1948_v2 }
 0x93b   : > { %v1919_v30 = vadd.f32 1.4214138, %v1915_v23  ;;  %v1889_v49 = vsel %vm3789_vm13, %v1888_v37, %v1884_v44  ;;  %v1899_v61 = vsel %vm1898_vm1, %v2934_v17, %v1895_v54  ;;  %v2936_v47 = vpop.eup %2935  ;;  %v1956_v29 = vmul.f32 1.442695, %v1949_v22 }
 0x93c   : > { %v1922_v36 = vmul.f32 %v1918_v9, %v3770_v58  ;;  %v1908_v53 = vmul.f32 1.0614054, %v1889_v49  ;;  %v1904_v15 = vsel %vm1901_vm2, %v1903_v57, %v1899_v61  ;;  %v2938_v14 = vpop.eup %2937  ;;  %2939 = vpow2.f32 %v1954_v19 }
 0x93d   : > { %v1923_v39 = vmul.f32 %v1919_v30, %v3775_v56  ;;  %v1909_v3 = vmul.f32 1.0614054, %v1904_v15  ;;  %2941 = vpow2.f32 %v1956_v29  ;;  %v1828_v57 = vmul.f32 0.5, %v3735_v16 }
 0x93e   : > { %v1926_v43 = vadd.f32 -0.28449672, %v1922_v36  ;;  %v1912_v60 = vadd.f32 -1.4531521, %v1908_v53  ;;  %v1989_v16 = vmax.f32 %v3739_v20, 0.0 }
 0x93f   : > { %v1927_v52 = vadd.f32 -0.28449672, %v1923_v39  ;;  %v1913_v13 = vadd.f32 -1.4531521, %v1909_v3 }
 0x940   : > { %v1930_v55 = vmul.f32 %v1926_v43, %v3770_v58  ;;  %v1916_v45 = vmul.f32 %v1912_v60, %v1889_v49  ;;  %v1986_v60 = vmax.f32 %v3717_v4, 0.0 }
 0x941   : > { %v1931_v59 = vmul.f32 %v1927_v52, %v3775_v56  ;;  %v1917_v24 = vmul.f32 %v1913_v13, %v1904_v15 }
 0x942   : > { %v1934_v62 = vadd.f32 0.2548296, %v1930_v55  ;;  %v1920_v12 = vadd.f32 1.4214138, %v1916_v45  ;;  %v2940_v36 = vpop.eup %2939 }
 0x943   : > { %v1935_v48 = vadd.f32 0.2548296, %v1931_v59  ;;  %v1921_v27 = vadd.f32 1.4214138, %v1917_v24  ;;  %v2942_v42 = vpop.eup %2941 }
 0x944   : > { %v1938_v10 = vmul.f32 %v1934_v62, %v3770_v58  ;;  %v1924_v23 = vmul.f32 %v1920_v12, %v1889_v49  ;;  %v1827_v62 = vmul.f32 0.5, %v3719_v5 }
 0x945   : > { %v1939_v11 = vmul.f32 %v1935_v48, %v3775_v56  ;;  %v1925_v58 = vmul.f32 %v1921_v27, %v1904_v15 }
 0x946   : > { %v1958_v17 = vmul.f32 %v2936_v47, %v1938_v10  ;;  %v1928_v9 = vadd.f32 -0.28449672, %v1924_v23  ;;  %v1987_v10 = vmax.f32 %v3719_v5, 0.0 }
 0x947   : > { %v1959_v8 = vmul.f32 %v2938_v14, %v1939_v11  ;;  %v1929_v18 = vadd.f32 -0.28449672, %v1925_v58  ;;  %v2886_v14 = vld [vmem:[%s764_s28] ss:$0 sm:$0xff] }
 0x948   : > { %v1962_v26 = vsub.f32 1.0, %v1958_v17  ;;  %v1932_v30 = vmul.f32 %v1928_v9, %v1889_v49 }
 0x949   : > { %v1963_v56 = vsub.f32 1.0, %v1959_v8  ;;  %v1933_v35 = vmul.f32 %v1929_v18, %v1904_v15 }
 0x94a   : > { %v1970_v0 = vsub.f32 0.0, %v1962_v26  ;;  %v1936_v32 = vadd.f32 0.2548296, %v1932_v30 }
 0x94b   : > { %v1971_v37 = vsub.f32 0.0, %v1963_v56  ;;  %v1937_v34 = vadd.f32 0.2548296, %v1933_v35 }
 0x94c   : > { %v1940_v33 = vmul.f32 %v1936_v32, %v1889_v49  ;;  %v1974_v31 = vsel %vm1966_vm3, %v1970_v0, %v1962_v26  ;;  %v1826_v49 = vmul.f32 0.5, %v3717_v4 }
 0x94d   : > { %v1941_v44 = vmul.f32 %v1937_v34, %v1904_v15  ;;  %v1978_v43 = vadd.f32 1.0, %v1974_v31  ;;  %v1975_v50 = vsel %vm1967_vm4, %v1971_v37, %v1963_v56  ;;  %v1829_v15 = vmul.f32 0.5, %v3739_v20 }
 0x94e   : > { %v1960_v41 = vmul.f32 %v2940_v36, %v1940_v33  ;;  %v1979_v55 = vadd.f32 1.0, %v1975_v50 }
 0x94f   : > { %v1961_v51 = vmul.f32 %v2942_v42, %v1941_v44  ;;  %v1982_v54 = vmul.f32 %v1978_v43, %v1826_v49  ;;  %v2888_v49 = vld [vmem:[%s770_s17] ss:$0 sm:$0xff]  ;;  %s3156_s17 = smov 8  }
 0x950   : > { %v1964_v39 = vsub.f32 1.0, %v1960_v41  ;;  %v1983_v48 = vmul.f32 %v1979_v55, %v1827_v62 }
 0x951   : > { %v1965_v53 = vsub.f32 1.0, %v1961_v51  ;;  %v1993_v4 = vsel %vm3822_vm6, %v1982_v54, %v1986_v60 }
 0x952   : > { %v1972_v46 = vsub.f32 0.0, %v1964_v39  ;;  %v1994_v25 = vsel %vm3822_vm6, %v1983_v48, %v1987_v10 }
 0x953   : > { %v1973_v61 = vsub.f32 0.0, %v1965_v53 }
 0x954   : > { %v1976_v52 = vsel %vm1968_vm5, %v1972_v46, %v1964_v39  ;;  %v2887_v46 = vld [vmem:[%s767_s13] ss:$0 sm:$0xff]  ;;  %s3154_s13 = smov [#allocation10]  }
 0x955   : > { %v1980_v59 = vadd.f32 1.0, %v1976_v52  ;;  %v1977_v63 = vsel %vm1969_vm7, %v1973_v61, %v1965_v53  ;;  %s2220_s29 = sshll.u32 %s3154_s13, 4  ;;  %s2221_s29 = int_to_ptr.vmem [resolvable:$true] %s2220_s29 }
 0x956   : > { %v1981_v45 = vadd.f32 1.0, %v1977_v63 }
 0x957   : > { %v1984_v2 = vmul.f32 %v1980_v59, %v1828_v57 }
 0x958   : > { %v1985_v11 = vmul.f32 %v1981_v45, %v1829_v15 }
 0x959   : > { %v1995_v3 = vsel %vm3822_vm6, %v1984_v2, %v1988_v21 }
 0x95a   : > { %v1997_v47 = vpack.c.bf16 %v1995_v3, %v1993_v4  ;;  %v1996_v12 = vsel %vm3822_vm6, %v1985_v11, %v1989_v16 }
 0x95b   : > { %v1998_v13 = vpack.c.bf16 %v1996_v12, %v1994_v25 }
 0x95c   : > { %2139 = vmatmul.bf16.vlgmr.msrb.gmra.mxu0 %v1997_v47 }
 0x95d   : > { %2153 = vmatmul.bf16.vlgmr.msra.gmra.mxu1 %v1998_v13 }
 0x9d9   : > { %v2140_v17 = vpop.f32.mrf.mxu0 }
 0x9da   : > { %v2141_v19 = vadd.f32 %v2886_v14, %v2140_v17  ;;  %v2154_v5 = vpop.f32.mrf.mxu1 }
 0x9dc   : > { %v2155_v22 = vadd.f32 %v2154_v5, %v2141_v19 }
 0x9de   : > { %v2159_v20 = vadd.f32 %v2155_v22, %v3710_v1 }
 0x9e0   : > { %2163 = vadd.xlane.f32.xlu0 %v2159_v20 }
 0x9e1   : > { %v2142_v23 = vpop.f32.mrf.mxu0 }
 0x9e2   : > { %v2143_v24 = vadd.f32 %v2886_v14, %v2142_v23  ;;  %v2156_v26 = vpop.f32.mrf.mxu1 }
 0x9e4   : > { %v2157_v8 = vadd.f32 %v2156_v26, %v2143_v24 }
 0x9e6   : > { %v2160_v9 = vadd.f32 %v2157_v8, %v3712_v40 }
 0x9e8   : > { %2165 = vadd.xlane.f32.xlu2 %v2160_v9 }
 0xa53   : > { %v2164_v27 = vpop.xlane.xlu0 %2163 }
 0xa54   : > { %v2167_v29 = vmul.f32 %v2164_v27, %v3647_v38 }
 0xa56   : > { %v2169_v30 = vsub.f32 %v2159_v20, %v2167_v29 }
 0xa58   : > { %v2171_v58 = vmul.f32 %v2169_v30, %v2169_v30 }
 0xa5a   : > { %2173 = vadd.xlane.f32.xlu1 %v2171_v58 }
 0xa5b   : > { %v2166_v0 = vpop.xlane.xlu2 %2165 }
 0xa5c   : > { %v2168_v56 = vmul.f32 %v2166_v0, %v3647_v38 }
 0xa5e   : > { %v2170_v32 = vsub.f32 %v2160_v9, %v2168_v56 }
 0xa60   : > { %v2172_v18 = vmul.f32 %v2170_v32, %v2170_v32 }
 0xa62   : > { %2175 = vadd.xlane.f32.xlu0 %v2172_v18 }
 0xacd   : > { %v2174_v1 = vpop.xlane.xlu1 %2173 }
 0xace   : > { %v2177_v33 = vmul.f32 %v2174_v1, %v3647_v38 }
 0xad0   : > { %v2179_v35 = vadd.f32 %v2177_v33, %v3690_v28 }
 0xad2   : > { %2943 = vrsqrt.f32 %v2179_v35  ;;  %vm2187_vm9 = vweird.f32 %v2179_v35 }
 0xad5   : > { %v2176_v40 = vpop.xlane.xlu0 %2175 }
 0xad6   : > { %v2178_v36 = vmul.f32 %v2176_v40, %v3647_v38 }
 0xad8   : > { %v2944_v31 = vpop.eup %2943  ;;  %v2180_v37 = vadd.f32 %v2178_v36, %v3690_v28 }
 0xad9   : > { %v2182_v41 = vmul.f32 %v2944_v31, %v2179_v35  ;;  %vm2188_vm8 = vweird.f32 %v2944_v31 }
 0xada   : > { %2945 = vrsqrt.f32 %v2180_v37  ;;  %vm2189_vm10 = vmor %vm2187_vm9, %vm2188_vm8  ;;  %vm2197_vm12 = vweird.f32 %v2180_v37 }
 0xadb   : > { %v2183_v34 = vmul.f32 %v2944_v31, %v2182_v41 }
 0xadd   : > { %v2184_v39 = vmul.f32 0.5, %v2183_v34 }
 0xadf   : > { %v2185_v44 = vsub.f32 1.5, %v2184_v39 }
 0xae0   : > { %v2946_v42 = vpop.eup %2945 }
 0xae1   : > { %v2186_v43 = vmul.f32 %v2944_v31, %v2185_v44  ;;  %v2192_v50 = vmul.f32 %v2946_v42, %v2180_v37  ;;  %vm2198_vm11 = vweird.f32 %v2946_v42 }
 0xae2   : > { %vm2199_vm13 = vmor %vm2197_vm12, %vm2198_vm11 }
 0xae3   : > { %v2190_v38 = vsel %vm2189_vm10, %v2944_v31, %v2186_v43  ;;  %v2193_v51 = vmul.f32 %v2946_v42, %v2192_v50 }
 0xae4   : > { %v2201_v28 = vmul.f32 %v2190_v38, %v2169_v30 }
 0xae5   : > { %v2194_v6 = vmul.f32 0.5, %v2193_v51 }
 0xae6   : > { %v2206_v52 = vmul.f32 %v2887_v46, %v2201_v28 }
 0xae7   : > { %v2195_v53 = vsub.f32 1.5, %v2194_v6 }
 0xae8   : > { %v2211_v54 = vadd.f32 %v2888_v49, %v2206_v52 }
 0xae9   : > { %v2196_v55 = vmul.f32 %v2946_v42, %v2195_v53 }
 0xaea   : > { %2213 = vst [vmem:[#allocation10] sm:$0xff] %v2211_v54 }
 0xaeb   : > { %v2200_v57 = vsel %vm2199_vm13, %v2946_v42, %v2196_v55 }
 0xaec   : > { %v2202_v59 = vmul.f32 %v2200_v57, %v2170_v32 }
 0xaee   : > { %v2207_v60 = vmul.f32 %v2887_v46, %v2202_v59 }
 0xaf0   : > { %v2212_v61 = vadd.f32 %v2888_v49, %v2207_v60 }
 0xaf2   : > { %2214 = vst [vmem:[#allocation10 + $0x8] sm:$0xff] %v2212_v61 }
 0xaf3   : > { %2795 = dma.vmem_to_hbm [thread:$0]  (%p2812_p5), %s2221_s29, 256, %s2223_s3, [#allocation4], %s3155_s15, %s3155_s15, %s3156_s17  }
 0xaf4   : > { %3124 = dma.done.wait (%p2812_p5), [#allocation4], 256  }
 0xaf5   : > { %3126 = vsyncadd (%p2812_p5), [#allocation4], 4294967040 }
 0xaf6 PF: > { %s3947_s24 = sld [smem:[#allocation17_spill]] }
 0xaf7   : > { %s3948_s21 = sld [smem:[#allocation15_spill]] }
 0xaf8   : > { %s3949_s22 = sld [smem:[#allocation16_spill]] }
 0xaf9   : > { %s3950_s23 = sld [smem:[#allocation18_spill]] }
 0xafc   : > { %p33_p9 = scmp.ge.s32.totalorder %s3947_s24, 6  }
 0xafe   :  { %35 = sbr.rel (!%p33_p9) target bundleno = 21 (0x15), region = 186 }
 0xb03   :  { %2239 = vsyncpa [#allocation3], 1 }
 0xb04   :  { %2241 = vsyncpa [#allocation3 + $0x1], 1 }
 0xb05   :  { %2242 = vsyncpa [#allocation6], 1 }
 0xb06   :  { %2244 = vsyncpa [#allocation6 + $0x1], 1 }
 0xb07   :  { %2245 = vsyncpa [#allocation9], 1 }
 0xb08   :  { %2247 = vsyncpa [#allocation9 + $0x1], 1 }
 0xb09   :  { %2248 = vsyncpa [#allocation4], 1 }
 0xb0a   :  { %2250 = vsyncpa [#allocation4 + $0x1], 1 }

</bundles_post_ra>
